<compile_context>
chip_gen: v5e
topology: v5e:2x2
jax: 0.10.0
libtpu: 0.0.40
codegen_flags: <defaults>
</compile_context>

<pallas_src>
import math
import numpy as np

import jax
import jax.numpy as jnp
from jax.experimental import pallas as pl
from jax.experimental.pallas import tpu as pltpu


def _encoder_kernel(xproj0_ref, seqlen_ref, wh0_ref, wx_ref, wh_ref, brest_ref,
                    pi_ref, pf_ref, po_ref, out_ref, c_scr, h_scr):
    Tc, bs, G = xproj0_ref.shape          # G = 4*U
    L, _, U = po_ref.shape

    chunk = pl.program_id(0)
    nchunks = pl.num_programs(0)

    # initial states are zeros (init_states=None in the reference)
    @pl.when(chunk == 0)
    def _():
        c_scr[...] = jnp.zeros_like(c_scr)
        h_scr[...] = jnp.zeros_like(h_scr)

    # ---- hoisted layer-constant loads / broadcasts (outside the time loop) ----
    wh0 = wh0_ref[...]                                              # (U, 4U)
    wx = [wx_ref[l] for l in range(L - 1)]                          # (U, 4U)
    wh = [wh_ref[l] for l in range(L - 1)]                          # (U, 4U)
    br = [jnp.broadcast_to(brest_ref[l], (bs, G)) for l in range(L - 1)]
    pi = [jnp.broadcast_to(pi_ref[l], (bs, U)) for l in range(L)]
    pf = [jnp.broadcast_to(pf_ref[l], (bs, U)) for l in range(L)]
    po = [jnp.broadcast_to(po_ref[l], (bs, U)) for l in range(L)]
    sl = seqlen_ref[...]                                            # (bs, U) int32

    # recurrent state is carried in registers inside the chunk (no per-step VMEM trips)
    c = [c_scr[l] for l in range(L)]
    h = [h_scr[l] for l in range(L)]

    t0 = chunk * Tc
    for tt in range(Tc):                 # static unroll inside the chunk
        t = t0 + tt
        keep = sl > t                    # (bs, U) bool: True while t < seq_len[b]
        x = None
        for l in range(L):               # static unroll over layers
            if l == 0:
                gates = xproj0_ref[tt] + jnp.dot(
                    h[0], wh0, preferred_element_type=jnp.float32)
            else:
                gates = (jnp.dot(x, wx[l - 1], preferred_element_type=jnp.float32)
                         + jnp.dot(h[l], wh[l - 1],
                                   preferred_element_type=jnp.float32)
                         + br[l - 1])
            # Gate order (reference code): i, j, f, o.  forget_bias is already folded
            # into the f-gate bias column.  Peephole terms go straight into the i/f
            # lane slices (no c replication across 4U lanes).
            i_s = jax.nn.sigmoid(gates[:, 0 * U:1 * U] + c[l] * pi[l])
            f_s = jax.nn.sigmoid(gates[:, 2 * U:3 * U] + c[l] * pf[l])
            j_t = jnp.tanh(gates[:, 1 * U:2 * U])
            o_t = gates[:, 3 * U:4 * U]
            c_cand = f_s * c[l] + i_s * j_t
            h_cand = jax.nn.sigmoid(o_t + c_cand * po[l]) * jnp.tanh(c_cand)
            # sequence-length masking: frozen lanes keep old state; output is zeroed.
            c[l] = jnp.where(keep, c_cand, c[l])
            h[l] = jnp.where(keep, h_cand, h[l])
            x = jnp.where(keep, h_cand, 0.0)   # masked hidden_seq -> next layer input

    for l in range(L):                   # carry state to the next chunk
        c_scr[l] = c[l]
        h_scr[l] = h[l]

    @pl.when(chunk == nchunks - 1)
    def _():
        parts = []
        for l in range(L):
            parts.append(c[l])
            parts.append(h[l])
        out_ref[...] = jnp.concatenate(parts, axis=-1)   # (bs, L*2*U) lane-dense store


def init_params(key, L, Vd, U, forget_bias=0.8):
    """Deterministic synthetic init matching the PyTorch parameter shapes."""
    stdv = 1.0 / math.sqrt(U)
    keys = iter(jax.random.split(key, 5 * L))
    W_full, bias, pi, pf, po = [], [], [], [], []
    for l in range(L):
        in_l = Vd if l == 0 else U                      # VB_input_dim for layer 0
        W_full.append(jax.random.uniform(next(keys), (in_l + U, 4 * U),
                                         jnp.float32, -stdv, stdv))
        bias.append(jax.random.uniform(next(keys), (4 * U,), jnp.float32, -stdv, stdv))
        pi.append(jax.random.uniform(next(keys), (U,), jnp.float32, -stdv, stdv))
        pf.append(jax.random.uniform(next(keys), (U,), jnp.float32, -stdv, stdv))
        po.append(jax.random.uniform(next(keys), (U,), jnp.float32, -stdv, stdv))

    fb_fold = jnp.zeros((4 * U,), jnp.float32).at[2 * U:3 * U].set(forget_bias)

    if L > 1:
        wx_rest = jnp.stack([W_full[l][:U] for l in range(1, L)])       # (L-1, U, 4U)
        wh_rest = jnp.stack([W_full[l][U:] for l in range(1, L)])       # (L-1, U, 4U)
        brest = jnp.stack([bias[l] + fb_fold for l in range(1, L)])[:, None, :]
    else:  # dummies (never read inside the kernel when L == 1)
        wx_rest = jnp.zeros((1, U, 4 * U), jnp.float32)
        wh_rest = jnp.zeros((1, U, 4 * U), jnp.float32)
        brest = jnp.zeros((1, 1, 4 * U), jnp.float32)

    return {
        # kernel-ready (all f32 — recurrence precision matches the reference)
        "Wx0": W_full[0][:Vd],                          # (Vd, 4U): XLA pre-projection
        "Wh0": W_full[0][Vd:],                          # (U, 4U)
        "bias0_fb": bias[0] + fb_fold,                  # bias0 + folded forget_bias
        "Wx_rest": wx_rest, "Wh_rest": wh_rest, "brest": brest,
        "peep_i": jnp.stack(pi)[:, None, :],            # (L, 1, U)
        "peep_f": jnp.stack(pf)[:, None, :],
        "peep_o": jnp.stack(po)[:, None, :],
        # raw (pure-JAX reference)
        "W_full": W_full, "bias_raw": bias,
        "peep_i_raw": pi, "peep_f_raw": pf, "peep_o_raw": po,
    }


def encoder_forward(inp, sequence_length, params, *, L, U, time_chunk=8):
    """Pallas implementation of Encoder.forward(inp, sequence_length, lang=False).

    NOTE: sequence_length must be concrete (numpy) — the module truncates the sequence
    to seq_len.max() at trace time, so this wrapper cannot be jitted over traced lengths.
    """
    seq_len = np.asarray(sequence_length)
    T = int(seq_len.max())                               # seq_sz = sequence_length.max()
    bs = inp.shape[1]
    G = 4 * U

    v = inp[:T].astype(jnp.float32)
    # Hoisted layer-0 input projection for all T steps (one matmul in XLA); layer-0
    # bias and forget_bias are folded in.
    xproj0 = jnp.einsum("tbv,vg->tbg", v, params["Wx0"]) + params["bias0_fb"]

    Tc = max(1, min(time_chunk, T))
    nchunks = (T + Tc - 1) // Tc
    Tpad = nchunks * Tc
    if Tpad != T:                        # zero-pad tail; masked out by keep in-kernel
        xproj0 = jnp.pad(xproj0, ((0, Tpad - T), (0, 0), (0, 0)))

    # tiny (bs, U) int32 tile instead of a (T, bs, U) f32 mask stream
    seqlen_bu = jnp.broadcast_to(
        jnp.asarray(seq_len, jnp.int32)[:, None], (bs, U))

    def resident(shape):                 # constant block index -> stays in VMEM
        zeros = (0,) * len(shape)
        return pl.BlockSpec(shape, lambda i, _z=zeros: _z)

    in_specs = [
        pl.BlockSpec((Tc, bs, G), lambda i: (i, 0, 0)),   # streamed xproj0 chunks
        resident((bs, U)),                                # seq_len
        resident(tuple(params["Wh0"].shape)),
        resident(tuple(params["Wx_rest"].shape)),
        resident(tuple(params["Wh_rest"].shape)),
        resident(tuple(params["brest"].shape)),
        resident(tuple(params["peep_i"].shape)),
        resident(tuple(params["peep_f"].shape)),
        resident(tuple(params["peep_o"].shape)),
    ]
    out_spec = pl.BlockSpec((bs, L * 2 * U), lambda i: (0, 0))

    # explicit scoped-VMEM budget: resident weights/state + double-buffered chunk
    resident_bytes = 4 * (params["Wh0"].size + params["Wx_rest"].size
                          + params["Wh_rest"].size + params["brest"].size
                          + params["peep_i"].size + params["peep_f"].size
                          + params["peep_o"].size + bs * U
                          + bs * L * 2 * U + 2 * L * bs * U)
    stream_bytes = 2 * Tc * bs * G * 4
    vmem_limit = int(min(max(resident_bytes + stream_bytes + (2 << 20), 16 << 20),
                         48 << 20))

    return pl.pallas_call(
        _encoder_kernel,
        out_shape=jax.ShapeDtypeStruct((bs, L * 2 * U), jnp.float32),
        grid_spec=pltpu.PrefetchScalarGridSpec(
            num_scalar_prefetch=0,
            grid=(nchunks,),
            in_specs=in_specs,
            out_specs=out_spec,
            scratch_shapes=[pltpu.VMEM((L, bs, U), jnp.float32),   # c carry
                            pltpu.VMEM((L, bs, U), jnp.float32)]),  # h carry
        compiler_params=pltpu.CompilerParams(
            dimension_semantics=("arbitrary",),
            vmem_limit_bytes=vmem_limit),
    )(xproj0, seqlen_bu, params["Wh0"], params["Wx_rest"], params["Wh_rest"],
      params["brest"], params["peep_i"], params["peep_f"], params["peep_o"])


def encoder_ref(inp, sequence_length, params, *, L, U, forget_bias=0.8):
    """Pure-JAX port of the PyTorch Encoder.forward (lang=False) for validation."""
    seq_len = np.asarray(sequence_length)
    T = int(seq_len.max())
    bs = inp.shape[1]
    sl = jnp.asarray(seq_len, jnp.int32)
    x_layer = inp[:T].astype(jnp.float32)
    cs, hs = [], []
    for l in range(L):
        W = params["W_full"][l]
        b = params["bias_raw"][l]
        pi, pf, po = (params["peep_i_raw"][l], params["peep_f_raw"][l],
                      params["peep_o_raw"][l])
        c = jnp.zeros((bs, U), jnp.float32)
        h = jnp.zeros((bs, U), jnp.float32)
        outs = []
        for t in range(T):
            x_t = x_layer[t]
            gates = jnp.concatenate([x_t, h], axis=1) @ W + b
            i_t = gates[:, :U]
            j_t = gates[:, U:2 * U]
            f_t = gates[:, 2 * U:3 * U]
            o_t = gates[:, 3 * U:]
            c_new = (jax.nn.sigmoid(f_t + forget_bias + c * pf) * c
                     + jax.nn.sigmoid(i_t + c * pi) * jnp.tanh(j_t))
            h_new = jax.nn.sigmoid(o_t + c_new * po) * jnp.tanh(c_new)
            keep = (sl > t)[:, None]
            outs.append(jnp.where(keep, h_new, 0.0))
            c = jnp.where(keep, c_new, c)
            h = jnp.where(keep, h_new, h)
        x_layer = jnp.stack(outs, axis=0)
        cs.append(c)
        hs.append(h)
    st = jnp.stack([jnp.stack(cs), jnp.stack(hs)], axis=1)    # (L, 2, bs, U)
    return jnp.transpose(st, (2, 0, 1, 3)).reshape(bs, L * 2 * U)


if __name__ == "__main__":
    # Small shapes consistent with the module:
    #   params.VB_num_layers = 2, params.VB_num_units = 32, params.VB_input_dim = 16
    L, U, Vd = 2, 32, 16
    bs, T = 2, 8

    key = jax.random.PRNGKey(0)
    k_par, k_v = jax.random.split(key)
    params = init_params(k_par, L, Vd, U, forget_bias=0.8)

    inp = jax.random.normal(k_v, (T, bs, Vd), jnp.float32)     # (seq, batch, feature)
    seq_len = np.array([T, T - 3], dtype=np.int32)             # exercises length masking

    # time_chunk=4 -> grid of 2 chunks: exercises the scratch state carry + final store
    out = encoder_forward(inp, seq_len, params, L=L, U=U, time_chunk=4)
    out = jax.block_until_ready(out)

    ref = encoder_ref(inp, seq_len, params, L=L, U=U, forget_bias=0.8)

    assert out.shape == (bs, L * 2 * U)
    assert bool(jnp.all(jnp.isfinite(out)))
    err = float(jnp.max(jnp.abs(out - ref)))
    assert err < 5e-3, err
    print("KERNEL_OK")
</pallas_src>

<mosaic_0001>
module attributes {stable_mosaic.version = 11 : i64} {
  func.func @_encoder_kernel(%arg0: i32, %arg1: memref<4x2x128xf32, #tpu.memory_space<vmem>>, %arg2: memref<2x32xi32, #tpu.memory_space<vmem>>, %arg3: memref<32x128xf32, #tpu.memory_space<vmem>>, %arg4: memref<1x32x128xf32, #tpu.memory_space<vmem>>, %arg5: memref<1x32x128xf32, #tpu.memory_space<vmem>>, %arg6: memref<1x1x128xf32, #tpu.memory_space<vmem>>, %arg7: memref<2x1x32xf32, #tpu.memory_space<vmem>>, %arg8: memref<2x1x32xf32, #tpu.memory_space<vmem>>, %arg9: memref<2x1x32xf32, #tpu.memory_space<vmem>>, %arg10: memref<2x128xf32, #tpu.memory_space<vmem>>, %arg11: memref<2x2x32xf32, #tpu.memory_space<vmem>>, %arg12: memref<2x2x32xf32, #tpu.memory_space<vmem>>) attributes {dimension_semantics = [#tpu.dimension_semantics<arbitrary>], iteration_bounds = array<i64: 2>, scalar_prefetch = 0 : i64, scratch_operands = 2 : i64, tpu.core_type = #tpu.core_type<tc>, window_params = [{transform_indices = @transform_0, window_bounds = array<i64: 4, 2, 128>}, {pipeline_mode = #tpu.pipeline_mode<synchronous>, transform_indices = @transform_1, window_bounds = array<i64: 2, 32>}, {pipeline_mode = #tpu.pipeline_mode<synchronous>, transform_indices = @transform_2, window_bounds = array<i64: 32, 128>}, {pipeline_mode = #tpu.pipeline_mode<synchronous>, transform_indices = @transform_3, window_bounds = array<i64: 1, 32, 128>}, {pipeline_mode = #tpu.pipeline_mode<synchronous>, transform_indices = @transform_4, window_bounds = array<i64: 1, 32, 128>}, {pipeline_mode = #tpu.pipeline_mode<synchronous>, transform_indices = @transform_5, window_bounds = array<i64: 1, 1, 128>}, {pipeline_mode = #tpu.pipeline_mode<synchronous>, transform_indices = @transform_6, window_bounds = array<i64: 2, 1, 32>}, {pipeline_mode = #tpu.pipeline_mode<synchronous>, transform_indices = @transform_7, window_bounds = array<i64: 2, 1, 32>}, {pipeline_mode = #tpu.pipeline_mode<synchronous>, transform_indices = @transform_8, window_bounds = array<i64: 2, 1, 32>}, {pipeline_mode = #tpu.pipeline_mode<synchronous>, transform_indices = @transform_9, window_bounds = array<i64: 2, 128>}]} {
    %c0_i32 = arith.constant 0 : i32
    %0 = arith.cmpi eq, %arg0, %c0_i32 : i32
    %1 = arith.extui %0 : i1 to i32
    %c0_i32_0 = arith.constant 0 : i32
    %2 = arith.cmpi ne, %1, %c0_i32_0 : i32
    scf.if %2 {
      %cst_106 = arith.constant 0.000000e+00 : f32
      %377 = vector.broadcast %cst_106 : f32 to vector<2x2x32xf32>
      %c0_107 = arith.constant 0 : index
      %c0_108 = arith.constant 0 : index
      %c0_109 = arith.constant 0 : index
      %378 = vector.load %arg11[%c0_107, %c0_108, %c0_109] : memref<2x2x32xf32, #tpu.memory_space<vmem>>, vector<2x2x32xf32>
      tpu.vector_store %arg11[%c0_107, %c0_108, %c0_109], %377 {strides = array<i32>} : memref<2x2x32xf32, #tpu.memory_space<vmem>>, vector<2x2x32xf32>,
      %cst_110 = arith.constant 0.000000e+00 : f32
      %379 = vector.broadcast %cst_110 : f32 to vector<2x2x32xf32>
      %c0_111 = arith.constant 0 : index
      %c0_112 = arith.constant 0 : index
      %c0_113 = arith.constant 0 : index
      %380 = vector.load %arg12[%c0_111, %c0_112, %c0_113] : memref<2x2x32xf32, #tpu.memory_space<vmem>>, vector<2x2x32xf32>
      tpu.vector_store %arg12[%c0_111, %c0_112, %c0_113], %379 {strides = array<i32>} : memref<2x2x32xf32, #tpu.memory_space<vmem>>, vector<2x2x32xf32>,
    } else {
    }
    %c0 = arith.constant 0 : index
    %c0_1 = arith.constant 0 : index
    %3 = vector.load %arg3[%c0, %c0_1] : memref<32x128xf32, #tpu.memory_space<vmem>>, vector<32x128xf32>
    %c0_2 = arith.constant 0 : index
    %c0_3 = arith.constant 0 : index
    %c0_4 = arith.constant 0 : index
    %4 = vector.load %arg4[%c0_2, %c0_3, %c0_4] : memref<1x32x128xf32, #tpu.memory_space<vmem>>, vector<1x32x128xf32>
    %5 = vector.shape_cast %4 : vector<1x32x128xf32> to vector<32x128xf32>
    %c0_5 = arith.constant 0 : index
    %c0_6 = arith.constant 0 : index
    %c0_7 = arith.constant 0 : index
    %6 = vector.load %arg5[%c0_5, %c0_6, %c0_7] : memref<1x32x128xf32, #tpu.memory_space<vmem>>, vector<1x32x128xf32>
    %7 = vector.shape_cast %6 : vector<1x32x128xf32> to vector<32x128xf32>
    %c0_8 = arith.constant 0 : index
    %c0_9 = arith.constant 0 : index
    %c0_10 = arith.constant 0 : index
    %8 = vector.load %arg6[%c0_8, %c0_9, %c0_10] : memref<1x1x128xf32, #tpu.memory_space<vmem>>, vector<1x1x128xf32>
    %9 = vector.shape_cast %8 : vector<1x1x128xf32> to vector<1x128xf32>
    %10 = vector.shape_cast %9 : vector<1x128xf32> to vector<1x128xf32>
    %11 = vector.broadcast %10 : vector<1x128xf32> to vector<2x128xf32>
    %c0_11 = arith.constant 0 : index
    %c0_12 = arith.constant 0 : index
    %c0_13 = arith.constant 0 : index
    %12 = vector.load %arg7[%c0_11, %c0_12, %c0_13] : memref<2x1x32xf32, #tpu.memory_space<vmem>>, vector<1x1x32xf32>
    %13 = vector.shape_cast %12 : vector<1x1x32xf32> to vector<1x32xf32>
    %14 = vector.shape_cast %13 : vector<1x32xf32> to vector<1x32xf32>
    %15 = vector.broadcast %14 : vector<1x32xf32> to vector<2x32xf32>
    %c1 = arith.constant 1 : index
    %c0_14 = arith.constant 0 : index
    %c0_15 = arith.constant 0 : index
    %16 = vector.load %arg7[%c1, %c0_14, %c0_15] : memref<2x1x32xf32, #tpu.memory_space<vmem>>, vector<1x1x32xf32>
    %17 = vector.shape_cast %16 : vector<1x1x32xf32> to vector<1x32xf32>
    %18 = vector.shape_cast %17 : vector<1x32xf32> to vector<1x32xf32>
    %19 = vector.broadcast %18 : vector<1x32xf32> to vector<2x32xf32>
    %c0_16 = arith.constant 0 : index
    %c0_17 = arith.constant 0 : index
    %c0_18 = arith.constant 0 : index
    %20 = vector.load %arg8[%c0_16, %c0_17, %c0_18] : memref<2x1x32xf32, #tpu.memory_space<vmem>>, vector<1x1x32xf32>
    %21 = vector.shape_cast %20 : vector<1x1x32xf32> to vector<1x32xf32>
    %22 = vector.shape_cast %21 : vector<1x32xf32> to vector<1x32xf32>
    %23 = vector.broadcast %22 : vector<1x32xf32> to vector<2x32xf32>
    %c1_19 = arith.constant 1 : index
    %c0_20 = arith.constant 0 : index
    %c0_21 = arith.constant 0 : index
    %24 = vector.load %arg8[%c1_19, %c0_20, %c0_21] : memref<2x1x32xf32, #tpu.memory_space<vmem>>, vector<1x1x32xf32>
    %25 = vector.shape_cast %24 : vector<1x1x32xf32> to vector<1x32xf32>
    %26 = vector.shape_cast %25 : vector<1x32xf32> to vector<1x32xf32>
    %27 = vector.broadcast %26 : vector<1x32xf32> to vector<2x32xf32>
    %c0_22 = arith.constant 0 : index
    %c0_23 = arith.constant 0 : index
    %c0_24 = arith.constant 0 : index
    %28 = vector.load %arg9[%c0_22, %c0_23, %c0_24] : memref<2x1x32xf32, #tpu.memory_space<vmem>>, vector<1x1x32xf32>
    %29 = vector.shape_cast %28 : vector<1x1x32xf32> to vector<1x32xf32>
    %30 = vector.shape_cast %29 : vector<1x32xf32> to vector<1x32xf32>
    %31 = vector.broadcast %30 : vector<1x32xf32> to vector<2x32xf32>
    %c1_25 = arith.constant 1 : index
    %c0_26 = arith.constant 0 : index
    %c0_27 = arith.constant 0 : index
    %32 = vector.load %arg9[%c1_25, %c0_26, %c0_27] : memref<2x1x32xf32, #tpu.memory_space<vmem>>, vector<1x1x32xf32>
    %33 = vector.shape_cast %32 : vector<1x1x32xf32> to vector<1x32xf32>
    %34 = vector.shape_cast %33 : vector<1x32xf32> to vector<1x32xf32>
    %35 = vector.broadcast %34 : vector<1x32xf32> to vector<2x32xf32>
    %c0_28 = arith.constant 0 : index
    %c0_29 = arith.constant 0 : index
    %36 = vector.load %arg2[%c0_28, %c0_29] : memref<2x32xi32, #tpu.memory_space<vmem>>, vector<2x32xi32>
    %c0_30 = arith.constant 0 : index
    %c0_31 = arith.constant 0 : index
    %c0_32 = arith.constant 0 : index
    %37 = vector.load %arg11[%c0_30, %c0_31, %c0_32] : memref<2x2x32xf32, #tpu.memory_space<vmem>>, vector<1x2x32xf32>
    %38 = vector.shape_cast %37 : vector<1x2x32xf32> to vector<2x32xf32>
    %c1_33 = arith.constant 1 : index
    %c0_34 = arith.constant 0 : index
    %c0_35 = arith.constant 0 : index
    %39 = vector.load %arg11[%c1_33, %c0_34, %c0_35] : memref<2x2x32xf32, #tpu.memory_space<vmem>>, vector<1x2x32xf32>
    %40 = vector.shape_cast %39 : vector<1x2x32xf32> to vector<2x32xf32>
    %c0_36 = arith.constant 0 : index
    %c0_37 = arith.constant 0 : index
    %c0_38 = arith.constant 0 : index
    %41 = vector.load %arg12[%c0_36, %c0_37, %c0_38] : memref<2x2x32xf32, #tpu.memory_space<vmem>>, vector<1x2x32xf32>
    %42 = vector.shape_cast %41 : vector<1x2x32xf32> to vector<2x32xf32>
    %c1_39 = arith.constant 1 : index
    %c0_40 = arith.constant 0 : index
    %c0_41 = arith.constant 0 : index
    %43 = vector.load %arg12[%c1_39, %c0_40, %c0_41] : memref<2x2x32xf32, #tpu.memory_space<vmem>>, vector<1x2x32xf32>
    %44 = vector.shape_cast %43 : vector<1x2x32xf32> to vector<2x32xf32>
    %c4_i32 = arith.constant 4 : i32
    %45 = arith.muli %arg0, %c4_i32 : i32
    %c0_i32_42 = arith.constant 0 : i32
    %46 = arith.addi %45, %c0_i32_42 : i32
    %47 = vector.broadcast %46 : i32 to vector<2x32xi32>
    %48 = arith.cmpi sgt, %36, %47 : vector<2x32xi32>
    %c0_43 = arith.constant 0 : index
    %c0_44 = arith.constant 0 : index
    %c0_45 = arith.constant 0 : index
    %49 = vector.load %arg1[%c0_43, %c0_44, %c0_45] : memref<4x2x128xf32, #tpu.memory_space<vmem>>, vector<1x2x128xf32>
    %50 = vector.shape_cast %49 : vector<1x2x128xf32> to vector<2x128xf32>
    %cst = arith.constant dense<0.000000e+00> : vector<2x128xf32>
    %51 = tpu.matmul %42, %3, %cst {dimension_numbers = #tpu.dot_dimension_numbers<[1], [0], [0], [1], [0, 0, 1, 1], [], []>} : vector<2x32xf32>, vector<32x128xf32>, vector<2x128xf32> -> vector<2x128xf32>
    %52 = arith.addf %50, %51 : vector<2x128xf32>
    %53 = vector.extract_strided_slice %52 {offsets = [0, 0], sizes = [2, 32], strides = [1, 1]} : vector<2x128xf32> to vector<2x32xf32>
    %54 = arith.mulf %38, %15 : vector<2x32xf32>
    %55 = arith.addf %53, %54 : vector<2x32xf32>
    %56 = arith.negf %55 : vector<2x32xf32>
    %57 = math.exp %56 : vector<2x32xf32>
    %cst_46 = arith.constant 1.000000e+00 : f32
    %58 = vector.broadcast %cst_46 : f32 to vector<2x32xf32>
    %59 = arith.addf %58, %57 : vector<2x32xf32>
    %60 = arith.divf %58, %59 : vector<2x32xf32>
    %61 = vector.extract_strided_slice %52 {offsets = [0, 64], sizes = [2, 32], strides = [1, 1]} : vector<2x128xf32> to vector<2x32xf32>
    %62 = arith.mulf %38, %23 : vector<2x32xf32>
    %63 = arith.addf %61, %62 : vector<2x32xf32>
    %64 = arith.negf %63 : vector<2x32xf32>
    %65 = math.exp %64 : vector<2x32xf32>
    %cst_47 = arith.constant 1.000000e+00 : f32
    %66 = vector.broadcast %cst_47 : f32 to vector<2x32xf32>
    %67 = arith.addf %66, %65 : vector<2x32xf32>
    %68 = arith.divf %66, %67 : vector<2x32xf32>
    %69 = vector.extract_strided_slice %52 {offsets = [0, 32], sizes = [2, 32], strides = [1, 1]} : vector<2x128xf32> to vector<2x32xf32>
    %70 = math.tanh %69 : vector<2x32xf32>
    %71 = vector.extract_strided_slice %52 {offsets = [0, 96], sizes = [2, 32], strides = [1, 1]} : vector<2x128xf32> to vector<2x32xf32>
    %72 = arith.mulf %68, %38 : vector<2x32xf32>
    %73 = arith.mulf %60, %70 : vector<2x32xf32>
    %74 = arith.addf %72, %73 : vector<2x32xf32>
    %75 = arith.mulf %74, %31 : vector<2x32xf32>
    %76 = arith.addf %71, %75 : vector<2x32xf32>
    %77 = arith.negf %76 : vector<2x32xf32>
    %78 = math.exp %77 : vector<2x32xf32>
    %cst_48 = arith.constant 1.000000e+00 : f32
    %79 = vector.broadcast %cst_48 : f32 to vector<2x32xf32>
    %80 = arith.addf %79, %78 : vector<2x32xf32>
    %81 = arith.divf %79, %80 : vector<2x32xf32>
    %82 = math.tanh %74 : vector<2x32xf32>
    %83 = arith.mulf %81, %82 : vector<2x32xf32>
    %84 = arith.select %48, %74, %38 : vector<2x32xi1>, vector<2x32xf32>
    %85 = arith.select %48, %83, %42 : vector<2x32xi1>, vector<2x32xf32>
    %cst_49 = arith.constant 0.000000e+00 : f32
    %86 = vector.broadcast %cst_49 : f32 to vector<2x32xf32>
    %87 = arith.select %48, %83, %86 : vector<2x32xi1>, vector<2x32xf32>
    %cst_50 = arith.constant dense<0.000000e+00> : vector<2x128xf32>
    %88 = tpu.matmul %87, %5, %cst_50 {dimension_numbers = #tpu.dot_dimension_numbers<[1], [0], [0], [1], [0, 0, 1, 1], [], []>} : vector<2x32xf32>, vector<32x128xf32>, vector<2x128xf32> -> vector<2x128xf32>
    %cst_51 = arith.constant dense<0.000000e+00> : vector<2x128xf32>
    %89 = tpu.matmul %44, %7, %cst_51 {dimension_numbers = #tpu.dot_dimension_numbers<[1], [0], [0], [1], [0, 0, 1, 1], [], []>} : vector<2x32xf32>, vector<32x128xf32>, vector<2x128xf32> -> vector<2x128xf32>
    %90 = arith.addf %88, %89 : vector<2x128xf32>
    %91 = arith.addf %90, %11 : vector<2x128xf32>
    %92 = vector.extract_strided_slice %91 {offsets = [0, 0], sizes = [2, 32], strides = [1, 1]} : vector<2x128xf32> to vector<2x32xf32>
    %93 = arith.mulf %40, %19 : vector<2x32xf32>
    %94 = arith.addf %92, %93 : vector<2x32xf32>
    %95 = arith.negf %94 : vector<2x32xf32>
    %96 = math.exp %95 : vector<2x32xf32>
    %cst_52 = arith.constant 1.000000e+00 : f32
    %97 = vector.broadcast %cst_52 : f32 to vector<2x32xf32>
    %98 = arith.addf %97, %96 : vector<2x32xf32>
    %99 = arith.divf %97, %98 : vector<2x32xf32>
    %100 = vector.extract_strided_slice %91 {offsets = [0, 64], sizes = [2, 32], strides = [1, 1]} : vector<2x128xf32> to vector<2x32xf32>
    %101 = arith.mulf %40, %27 : vector<2x32xf32>
    %102 = arith.addf %100, %101 : vector<2x32xf32>
    %103 = arith.negf %102 : vector<2x32xf32>
    %104 = math.exp %103 : vector<2x32xf32>
    %cst_53 = arith.constant 1.000000e+00 : f32
    %105 = vector.broadcast %cst_53 : f32 to vector<2x32xf32>
    %106 = arith.addf %105, %104 : vector<2x32xf32>
    %107 = arith.divf %105, %106 : vector<2x32xf32>
    %108 = vector.extract_strided_slice %91 {offsets = [0, 32], sizes = [2, 32], strides = [1, 1]} : vector<2x128xf32> to vector<2x32xf32>
    %109 = math.tanh %108 : vector<2x32xf32>
    %110 = vector.extract_strided_slice %91 {offsets = [0, 96], sizes = [2, 32], strides = [1, 1]} : vector<2x128xf32> to vector<2x32xf32>
    %111 = arith.mulf %107, %40 : vector<2x32xf32>
    %112 = arith.mulf %99, %109 : vector<2x32xf32>
    %113 = arith.addf %111, %112 : vector<2x32xf32>
    %114 = arith.mulf %113, %35 : vector<2x32xf32>
    %115 = arith.addf %110, %114 : vector<2x32xf32>
    %116 = arith.negf %115 : vector<2x32xf32>
    %117 = math.exp %116 : vector<2x32xf32>
    %cst_54 = arith.constant 1.000000e+00 : f32
    %118 = vector.broadcast %cst_54 : f32 to vector<2x32xf32>
    %119 = arith.addf %118, %117 : vector<2x32xf32>
    %120 = arith.divf %118, %119 : vector<2x32xf32>
    %121 = math.tanh %113 : vector<2x32xf32>
    %122 = arith.mulf %120, %121 : vector<2x32xf32>
    %123 = arith.select %48, %113, %40 : vector<2x32xi1>, vector<2x32xf32>
    %124 = arith.select %48, %122, %44 : vector<2x32xi1>, vector<2x32xf32>
    %c1_i32 = arith.constant 1 : i32
    %125 = arith.addi %45, %c1_i32 : i32
    %126 = vector.broadcast %125 : i32 to vector<2x32xi32>
    %127 = arith.cmpi sgt, %36, %126 : vector<2x32xi32>
    %c1_55 = arith.constant 1 : index
    %c0_56 = arith.constant 0 : index
    %c0_57 = arith.constant 0 : index
    %128 = vector.load %arg1[%c1_55, %c0_56, %c0_57] : memref<4x2x128xf32, #tpu.memory_space<vmem>>, vector<1x2x128xf32>
    %129 = vector.shape_cast %128 : vector<1x2x128xf32> to vector<2x128xf32>
    %cst_58 = arith.constant dense<0.000000e+00> : vector<2x128xf32>
    %130 = tpu.matmul %85, %3, %cst_58 {dimension_numbers = #tpu.dot_dimension_numbers<[1], [0], [0], [1], [0, 0, 1, 1], [], []>} : vector<2x32xf32>, vector<32x128xf32>, vector<2x128xf32> -> vector<2x128xf32>
    %131 = arith.addf %129, %130 : vector<2x128xf32>
    %132 = vector.extract_strided_slice %131 {offsets = [0, 0], sizes = [2, 32], strides = [1, 1]} : vector<2x128xf32> to vector<2x32xf32>
    %133 = arith.mulf %84, %15 : vector<2x32xf32>
    %134 = arith.addf %132, %133 : vector<2x32xf32>
    %135 = arith.negf %134 : vector<2x32xf32>
    %136 = math.exp %135 : vector<2x32xf32>
    %cst_59 = arith.constant 1.000000e+00 : f32
    %137 = vector.broadcast %cst_59 : f32 to vector<2x32xf32>
    %138 = arith.addf %137, %136 : vector<2x32xf32>
    %139 = arith.divf %137, %138 : vector<2x32xf32>
    %140 = vector.extract_strided_slice %131 {offsets = [0, 64], sizes = [2, 32], strides = [1, 1]} : vector<2x128xf32> to vector<2x32xf32>
    %141 = arith.mulf %84, %23 : vector<2x32xf32>
    %142 = arith.addf %140, %141 : vector<2x32xf32>
    %143 = arith.negf %142 : vector<2x32xf32>
    %144 = math.exp %143 : vector<2x32xf32>
    %cst_60 = arith.constant 1.000000e+00 : f32
    %145 = vector.broadcast %cst_60 : f32 to vector<2x32xf32>
    %146 = arith.addf %145, %144 : vector<2x32xf32>
    %147 = arith.divf %145, %146 : vector<2x32xf32>
    %148 = vector.extract_strided_slice %131 {offsets = [0, 32], sizes = [2, 32], strides = [1, 1]} : vector<2x128xf32> to vector<2x32xf32>
    %149 = math.tanh %148 : vector<2x32xf32>
    %150 = vector.extract_strided_slice %131 {offsets = [0, 96], sizes = [2, 32], strides = [1, 1]} : vector<2x128xf32> to vector<2x32xf32>
    %151 = arith.mulf %147, %84 : vector<2x32xf32>
    %152 = arith.mulf %139, %149 : vector<2x32xf32>
    %153 = arith.addf %151, %152 : vector<2x32xf32>
    %154 = arith.mulf %153, %31 : vector<2x32xf32>
    %155 = arith.addf %150, %154 : vector<2x32xf32>
    %156 = arith.negf %155 : vector<2x32xf32>
    %157 = math.exp %156 : vector<2x32xf32>
    %cst_61 = arith.constant 1.000000e+00 : f32
    %158 = vector.broadcast %cst_61 : f32 to vector<2x32xf32>
    %159 = arith.addf %158, %157 : vector<2x32xf32>
    %160 = arith.divf %158, %159 : vector<2x32xf32>
    %161 = math.tanh %153 : vector<2x32xf32>
    %162 = arith.mulf %160, %161 : vector<2x32xf32>
    %163 = arith.select %127, %153, %84 : vector<2x32xi1>, vector<2x32xf32>
    %164 = arith.select %127, %162, %85 : vector<2x32xi1>, vector<2x32xf32>
    %cst_62 = arith.constant 0.000000e+00 : f32
    %165 = vector.broadcast %cst_62 : f32 to vector<2x32xf32>
    %166 = arith.select %127, %162, %165 : vector<2x32xi1>, vector<2x32xf32>
    %cst_63 = arith.constant dense<0.000000e+00> : vector<2x128xf32>
    %167 = tpu.matmul %166, %5, %cst_63 {dimension_numbers = #tpu.dot_dimension_numbers<[1], [0], [0], [1], [0, 0, 1, 1], [], []>} : vector<2x32xf32>, vector<32x128xf32>, vector<2x128xf32> -> vector<2x128xf32>
    %cst_64 = arith.constant dense<0.000000e+00> : vector<2x128xf32>
    %168 = tpu.matmul %124, %7, %cst_64 {dimension_numbers = #tpu.dot_dimension_numbers<[1], [0], [0], [1], [0, 0, 1, 1], [], []>} : vector<2x32xf32>, vector<32x128xf32>, vector<2x128xf32> -> vector<2x128xf32>
    %169 = arith.addf %167, %168 : vector<2x128xf32>
    %170 = arith.addf %169, %11 : vector<2x128xf32>
    %171 = vector.extract_strided_slice %170 {offsets = [0, 0], sizes = [2, 32], strides = [1, 1]} : vector<2x128xf32> to vector<2x32xf32>
    %172 = arith.mulf %123, %19 : vector<2x32xf32>
    %173 = arith.addf %171, %172 : vector<2x32xf32>
    %174 = arith.negf %173 : vector<2x32xf32>
    %175 = math.exp %174 : vector<2x32xf32>
    %cst_65 = arith.constant 1.000000e+00 : f32
    %176 = vector.broadcast %cst_65 : f32 to vector<2x32xf32>
    %177 = arith.addf %176, %175 : vector<2x32xf32>
    %178 = arith.divf %176, %177 : vector<2x32xf32>
    %179 = vector.extract_strided_slice %170 {offsets = [0, 64], sizes = [2, 32], strides = [1, 1]} : vector<2x128xf32> to vector<2x32xf32>
    %180 = arith.mulf %123, %27 : vector<2x32xf32>
    %181 = arith.addf %179, %180 : vector<2x32xf32>
    %182 = arith.negf %181 : vector<2x32xf32>
    %183 = math.exp %182 : vector<2x32xf32>
    %cst_66 = arith.constant 1.000000e+00 : f32
    %184 = vector.broadcast %cst_66 : f32 to vector<2x32xf32>
    %185 = arith.addf %184, %183 : vector<2x32xf32>
    %186 = arith.divf %184, %185 : vector<2x32xf32>
    %187 = vector.extract_strided_slice %170 {offsets = [0, 32], sizes = [2, 32], strides = [1, 1]} : vector<2x128xf32> to vector<2x32xf32>
    %188 = math.tanh %187 : vector<2x32xf32>
    %189 = vector.extract_strided_slice %170 {offsets = [0, 96], sizes = [2, 32], strides = [1, 1]} : vector<2x128xf32> to vector<2x32xf32>
    %190 = arith.mulf %186, %123 : vector<2x32xf32>
    %191 = arith.mulf %178, %188 : vector<2x32xf32>
    %192 = arith.addf %190, %191 : vector<2x32xf32>
    %193 = arith.mulf %192, %35 : vector<2x32xf32>
    %194 = arith.addf %189, %193 : vector<2x32xf32>
    %195 = arith.negf %194 : vector<2x32xf32>
    %196 = math.exp %195 : vector<2x32xf32>
    %cst_67 = arith.constant 1.000000e+00 : f32
    %197 = vector.broadcast %cst_67 : f32 to vector<2x32xf32>
    %198 = arith.addf %197, %196 : vector<2x32xf32>
    %199 = arith.divf %197, %198 : vector<2x32xf32>
    %200 = math.tanh %192 : vector<2x32xf32>
    %201 = arith.mulf %199, %200 : vector<2x32xf32>
    %202 = arith.select %127, %192, %123 : vector<2x32xi1>, vector<2x32xf32>
    %203 = arith.select %127, %201, %124 : vector<2x32xi1>, vector<2x32xf32>
    %c2_i32 = arith.constant 2 : i32
    %204 = arith.addi %45, %c2_i32 : i32
    %205 = vector.broadcast %204 : i32 to vector<2x32xi32>
    %206 = arith.cmpi sgt, %36, %205 : vector<2x32xi32>
    %c2 = arith.constant 2 : index
    %c0_68 = arith.constant 0 : index
    %c0_69 = arith.constant 0 : index
    %207 = vector.load %arg1[%c2, %c0_68, %c0_69] : memref<4x2x128xf32, #tpu.memory_space<vmem>>, vector<1x2x128xf32>
    %208 = vector.shape_cast %207 : vector<1x2x128xf32> to vector<2x128xf32>
    %cst_70 = arith.constant dense<0.000000e+00> : vector<2x128xf32>
    %209 = tpu.matmul %164, %3, %cst_70 {dimension_numbers = #tpu.dot_dimension_numbers<[1], [0], [0], [1], [0, 0, 1, 1], [], []>} : vector<2x32xf32>, vector<32x128xf32>, vector<2x128xf32> -> vector<2x128xf32>
    %210 = arith.addf %208, %209 : vector<2x128xf32>
    %211 = vector.extract_strided_slice %210 {offsets = [0, 0], sizes = [2, 32], strides = [1, 1]} : vector<2x128xf32> to vector<2x32xf32>
    %212 = arith.mulf %163, %15 : vector<2x32xf32>
    %213 = arith.addf %211, %212 : vector<2x32xf32>
    %214 = arith.negf %213 : vector<2x32xf32>
    %215 = math.exp %214 : vector<2x32xf32>
    %cst_71 = arith.constant 1.000000e+00 : f32
    %216 = vector.broadcast %cst_71 : f32 to vector<2x32xf32>
    %217 = arith.addf %216, %215 : vector<2x32xf32>
    %218 = arith.divf %216, %217 : vector<2x32xf32>
    %219 = vector.extract_strided_slice %210 {offsets = [0, 64], sizes = [2, 32], strides = [1, 1]} : vector<2x128xf32> to vector<2x32xf32>
    %220 = arith.mulf %163, %23 : vector<2x32xf32>
    %221 = arith.addf %219, %220 : vector<2x32xf32>
    %222 = arith.negf %221 : vector<2x32xf32>
    %223 = math.exp %222 : vector<2x32xf32>
    %cst_72 = arith.constant 1.000000e+00 : f32
    %224 = vector.broadcast %cst_72 : f32 to vector<2x32xf32>
    %225 = arith.addf %224, %223 : vector<2x32xf32>
    %226 = arith.divf %224, %225 : vector<2x32xf32>
    %227 = vector.extract_strided_slice %210 {offsets = [0, 32], sizes = [2, 32], strides = [1, 1]} : vector<2x128xf32> to vector<2x32xf32>
    %228 = math.tanh %227 : vector<2x32xf32>
    %229 = vector.extract_strided_slice %210 {offsets = [0, 96], sizes = [2, 32], strides = [1, 1]} : vector<2x128xf32> to vector<2x32xf32>
    %230 = arith.mulf %226, %163 : vector<2x32xf32>
    %231 = arith.mulf %218, %228 : vector<2x32xf32>
    %232 = arith.addf %230, %231 : vector<2x32xf32>
    %233 = arith.mulf %232, %31 : vector<2x32xf32>
    %234 = arith.addf %229, %233 : vector<2x32xf32>
    %235 = arith.negf %234 : vector<2x32xf32>
    %236 = math.exp %235 : vector<2x32xf32>
    %cst_73 = arith.constant 1.000000e+00 : f32
    %237 = vector.broadcast %cst_73 : f32 to vector<2x32xf32>
    %238 = arith.addf %237, %236 : vector<2x32xf32>
    %239 = arith.divf %237, %238 : vector<2x32xf32>
    %240 = math.tanh %232 : vector<2x32xf32>
    %241 = arith.mulf %239, %240 : vector<2x32xf32>
    %242 = arith.select %206, %232, %163 : vector<2x32xi1>, vector<2x32xf32>
    %243 = arith.select %206, %241, %164 : vector<2x32xi1>, vector<2x32xf32>
    %cst_74 = arith.constant 0.000000e+00 : f32
    %244 = vector.broadcast %cst_74 : f32 to vector<2x32xf32>
    %245 = arith.select %206, %241, %244 : vector<2x32xi1>, vector<2x32xf32>
    %cst_75 = arith.constant dense<0.000000e+00> : vector<2x128xf32>
    %246 = tpu.matmul %245, %5, %cst_75 {dimension_numbers = #tpu.dot_dimension_numbers<[1], [0], [0], [1], [0, 0, 1, 1], [], []>} : vector<2x32xf32>, vector<32x128xf32>, vector<2x128xf32> -> vector<2x128xf32>
    %cst_76 = arith.constant dense<0.000000e+00> : vector<2x128xf32>
    %247 = tpu.matmul %203, %7, %cst_76 {dimension_numbers = #tpu.dot_dimension_numbers<[1], [0], [0], [1], [0, 0, 1, 1], [], []>} : vector<2x32xf32>, vector<32x128xf32>, vector<2x128xf32> -> vector<2x128xf32>
    %248 = arith.addf %246, %247 : vector<2x128xf32>
    %249 = arith.addf %248, %11 : vector<2x128xf32>
    %250 = vector.extract_strided_slice %249 {offsets = [0, 0], sizes = [2, 32], strides = [1, 1]} : vector<2x128xf32> to vector<2x32xf32>
    %251 = arith.mulf %202, %19 : vector<2x32xf32>
    %252 = arith.addf %250, %251 : vector<2x32xf32>
    %253 = arith.negf %252 : vector<2x32xf32>
    %254 = math.exp %253 : vector<2x32xf32>
    %cst_77 = arith.constant 1.000000e+00 : f32
    %255 = vector.broadcast %cst_77 : f32 to vector<2x32xf32>
    %256 = arith.addf %255, %254 : vector<2x32xf32>
    %257 = arith.divf %255, %256 : vector<2x32xf32>
    %258 = vector.extract_strided_slice %249 {offsets = [0, 64], sizes = [2, 32], strides = [1, 1]} : vector<2x128xf32> to vector<2x32xf32>
    %259 = arith.mulf %202, %27 : vector<2x32xf32>
    %260 = arith.addf %258, %259 : vector<2x32xf32>
    %261 = arith.negf %260 : vector<2x32xf32>
    %262 = math.exp %261 : vector<2x32xf32>
    %cst_78 = arith.constant 1.000000e+00 : f32
    %263 = vector.broadcast %cst_78 : f32 to vector<2x32xf32>
    %264 = arith.addf %263, %262 : vector<2x32xf32>
    %265 = arith.divf %263, %264 : vector<2x32xf32>
    %266 = vector.extract_strided_slice %249 {offsets = [0, 32], sizes = [2, 32], strides = [1, 1]} : vector<2x128xf32> to vector<2x32xf32>
    %267 = math.tanh %266 : vector<2x32xf32>
    %268 = vector.extract_strided_slice %249 {offsets = [0, 96], sizes = [2, 32], strides = [1, 1]} : vector<2x128xf32> to vector<2x32xf32>
    %269 = arith.mulf %265, %202 : vector<2x32xf32>
    %270 = arith.mulf %257, %267 : vector<2x32xf32>
    %271 = arith.addf %269, %270 : vector<2x32xf32>
    %272 = arith.mulf %271, %35 : vector<2x32xf32>
    %273 = arith.addf %268, %272 : vector<2x32xf32>
    %274 = arith.negf %273 : vector<2x32xf32>
    %275 = math.exp %274 : vector<2x32xf32>
    %cst_79 = arith.constant 1.000000e+00 : f32
    %276 = vector.broadcast %cst_79 : f32 to vector<2x32xf32>
    %277 = arith.addf %276, %275 : vector<2x32xf32>
    %278 = arith.divf %276, %277 : vector<2x32xf32>
    %279 = math.tanh %271 : vector<2x32xf32>
    %280 = arith.mulf %278, %279 : vector<2x32xf32>
    %281 = arith.select %206, %271, %202 : vector<2x32xi1>, vector<2x32xf32>
    %282 = arith.select %206, %280, %203 : vector<2x32xi1>, vector<2x32xf32>
    %c3_i32 = arith.constant 3 : i32
    %283 = arith.addi %45, %c3_i32 : i32
    %284 = vector.broadcast %283 : i32 to vector<2x32xi32>
    %285 = arith.cmpi sgt, %36, %284 : vector<2x32xi32>
    %c3 = arith.constant 3 : index
    %c0_80 = arith.constant 0 : index
    %c0_81 = arith.constant 0 : index
    %286 = vector.load %arg1[%c3, %c0_80, %c0_81] : memref<4x2x128xf32, #tpu.memory_space<vmem>>, vector<1x2x128xf32>
    %287 = vector.shape_cast %286 : vector<1x2x128xf32> to vector<2x128xf32>
    %cst_82 = arith.constant dense<0.000000e+00> : vector<2x128xf32>
    %288 = tpu.matmul %243, %3, %cst_82 {dimension_numbers = #tpu.dot_dimension_numbers<[1], [0], [0], [1], [0, 0, 1, 1], [], []>} : vector<2x32xf32>, vector<32x128xf32>, vector<2x128xf32> -> vector<2x128xf32>
    %289 = arith.addf %287, %288 : vector<2x128xf32>
    %290 = vector.extract_strided_slice %289 {offsets = [0, 0], sizes = [2, 32], strides = [1, 1]} : vector<2x128xf32> to vector<2x32xf32>
    %291 = arith.mulf %242, %15 : vector<2x32xf32>
    %292 = arith.addf %290, %291 : vector<2x32xf32>
    %293 = arith.negf %292 : vector<2x32xf32>
    %294 = math.exp %293 : vector<2x32xf32>
    %cst_83 = arith.constant 1.000000e+00 : f32
    %295 = vector.broadcast %cst_83 : f32 to vector<2x32xf32>
    %296 = arith.addf %295, %294 : vector<2x32xf32>
    %297 = arith.divf %295, %296 : vector<2x32xf32>
    %298 = vector.extract_strided_slice %289 {offsets = [0, 64], sizes = [2, 32], strides = [1, 1]} : vector<2x128xf32> to vector<2x32xf32>
    %299 = arith.mulf %242, %23 : vector<2x32xf32>
    %300 = arith.addf %298, %299 : vector<2x32xf32>
    %301 = arith.negf %300 : vector<2x32xf32>
    %302 = math.exp %301 : vector<2x32xf32>
    %cst_84 = arith.constant 1.000000e+00 : f32
    %303 = vector.broadcast %cst_84 : f32 to vector<2x32xf32>
    %304 = arith.addf %303, %302 : vector<2x32xf32>
    %305 = arith.divf %303, %304 : vector<2x32xf32>
    %306 = vector.extract_strided_slice %289 {offsets = [0, 32], sizes = [2, 32], strides = [1, 1]} : vector<2x128xf32> to vector<2x32xf32>
    %307 = math.tanh %306 : vector<2x32xf32>
    %308 = vector.extract_strided_slice %289 {offsets = [0, 96], sizes = [2, 32], strides = [1, 1]} : vector<2x128xf32> to vector<2x32xf32>
    %309 = arith.mulf %305, %242 : vector<2x32xf32>
    %310 = arith.mulf %297, %307 : vector<2x32xf32>
    %311 = arith.addf %309, %310 : vector<2x32xf32>
    %312 = arith.mulf %311, %31 : vector<2x32xf32>
    %313 = arith.addf %308, %312 : vector<2x32xf32>
    %314 = arith.negf %313 : vector<2x32xf32>
    %315 = math.exp %314 : vector<2x32xf32>
    %cst_85 = arith.constant 1.000000e+00 : f32
    %316 = vector.broadcast %cst_85 : f32 to vector<2x32xf32>
    %317 = arith.addf %316, %315 : vector<2x32xf32>
    %318 = arith.divf %316, %317 : vector<2x32xf32>
    %319 = math.tanh %311 : vector<2x32xf32>
    %320 = arith.mulf %318, %319 : vector<2x32xf32>
    %321 = arith.select %285, %311, %242 : vector<2x32xi1>, vector<2x32xf32>
    %322 = arith.select %285, %320, %243 : vector<2x32xi1>, vector<2x32xf32>
    %cst_86 = arith.constant 0.000000e+00 : f32
    %323 = vector.broadcast %cst_86 : f32 to vector<2x32xf32>
    %324 = arith.select %285, %320, %323 : vector<2x32xi1>, vector<2x32xf32>
    %cst_87 = arith.constant dense<0.000000e+00> : vector<2x128xf32>
    %325 = tpu.matmul %324, %5, %cst_87 {dimension_numbers = #tpu.dot_dimension_numbers<[1], [0], [0], [1], [0, 0, 1, 1], [], []>} : vector<2x32xf32>, vector<32x128xf32>, vector<2x128xf32> -> vector<2x128xf32>
    %cst_88 = arith.constant dense<0.000000e+00> : vector<2x128xf32>
    %326 = tpu.matmul %282, %7, %cst_88 {dimension_numbers = #tpu.dot_dimension_numbers<[1], [0], [0], [1], [0, 0, 1, 1], [], []>} : vector<2x32xf32>, vector<32x128xf32>, vector<2x128xf32> -> vector<2x128xf32>
    %327 = arith.addf %325, %326 : vector<2x128xf32>
    %328 = arith.addf %327, %11 : vector<2x128xf32>
    %329 = vector.extract_strided_slice %328 {offsets = [0, 0], sizes = [2, 32], strides = [1, 1]} : vector<2x128xf32> to vector<2x32xf32>
    %330 = arith.mulf %281, %19 : vector<2x32xf32>
    %331 = arith.addf %329, %330 : vector<2x32xf32>
    %332 = arith.negf %331 : vector<2x32xf32>
    %333 = math.exp %332 : vector<2x32xf32>
    %cst_89 = arith.constant 1.000000e+00 : f32
    %334 = vector.broadcast %cst_89 : f32 to vector<2x32xf32>
    %335 = arith.addf %334, %333 : vector<2x32xf32>
    %336 = arith.divf %334, %335 : vector<2x32xf32>
    %337 = vector.extract_strided_slice %328 {offsets = [0, 64], sizes = [2, 32], strides = [1, 1]} : vector<2x128xf32> to vector<2x32xf32>
    %338 = arith.mulf %281, %27 : vector<2x32xf32>
    %339 = arith.addf %337, %338 : vector<2x32xf32>
    %340 = arith.negf %339 : vector<2x32xf32>
    %341 = math.exp %340 : vector<2x32xf32>
    %cst_90 = arith.constant 1.000000e+00 : f32
    %342 = vector.broadcast %cst_90 : f32 to vector<2x32xf32>
    %343 = arith.addf %342, %341 : vector<2x32xf32>
    %344 = arith.divf %342, %343 : vector<2x32xf32>
    %345 = vector.extract_strided_slice %328 {offsets = [0, 32], sizes = [2, 32], strides = [1, 1]} : vector<2x128xf32> to vector<2x32xf32>
    %346 = math.tanh %345 : vector<2x32xf32>
    %347 = vector.extract_strided_slice %328 {offsets = [0, 96], sizes = [2, 32], strides = [1, 1]} : vector<2x128xf32> to vector<2x32xf32>
    %348 = arith.mulf %344, %281 : vector<2x32xf32>
    %349 = arith.mulf %336, %346 : vector<2x32xf32>
    %350 = arith.addf %348, %349 : vector<2x32xf32>
    %351 = arith.mulf %350, %35 : vector<2x32xf32>
    %352 = arith.addf %347, %351 : vector<2x32xf32>
    %353 = arith.negf %352 : vector<2x32xf32>
    %354 = math.exp %353 : vector<2x32xf32>
    %cst_91 = arith.constant 1.000000e+00 : f32
    %355 = vector.broadcast %cst_91 : f32 to vector<2x32xf32>
    %356 = arith.addf %355, %354 : vector<2x32xf32>
    %357 = arith.divf %355, %356 : vector<2x32xf32>
    %358 = math.tanh %350 : vector<2x32xf32>
    %359 = arith.mulf %357, %358 : vector<2x32xf32>
    %360 = arith.select %285, %350, %281 : vector<2x32xi1>, vector<2x32xf32>
    %361 = arith.select %285, %359, %282 : vector<2x32xi1>, vector<2x32xf32>
    %c0_92 = arith.constant 0 : index
    %c0_93 = arith.constant 0 : index
    %c0_94 = arith.constant 0 : index
    %362 = vector.load %arg11[%c0_92, %c0_93, %c0_94] : memref<2x2x32xf32, #tpu.memory_space<vmem>>, vector<1x2x32xf32>
    %363 = vector.shape_cast %362 : vector<1x2x32xf32> to vector<2x32xf32>
    %364 = vector.shape_cast %321 : vector<2x32xf32> to vector<1x2x32xf32>
    tpu.vector_store %arg11[%c0_92, %c0_93, %c0_94], %364 {strides = array<i32>} : memref<2x2x32xf32, #tpu.memory_space<vmem>>, vector<1x2x32xf32>,
    %c0_95 = arith.constant 0 : index
    %c0_96 = arith.constant 0 : index
    %c0_97 = arith.constant 0 : index
    %365 = vector.load %arg12[%c0_95, %c0_96, %c0_97] : memref<2x2x32xf32, #tpu.memory_space<vmem>>, vector<1x2x32xf32>
    %366 = vector.shape_cast %365 : vector<1x2x32xf32> to vector<2x32xf32>
    %367 = vector.shape_cast %322 : vector<2x32xf32> to vector<1x2x32xf32>
    tpu.vector_store %arg12[%c0_95, %c0_96, %c0_97], %367 {strides = array<i32>} : memref<2x2x32xf32, #tpu.memory_space<vmem>>, vector<1x2x32xf32>,
    %c1_98 = arith.constant 1 : index
    %c0_99 = arith.constant 0 : index
    %c0_100 = arith.constant 0 : index
    %368 = vector.load %arg11[%c1_98, %c0_99, %c0_100] : memref<2x2x32xf32, #tpu.memory_space<vmem>>, vector<1x2x32xf32>
    %369 = vector.shape_cast %368 : vector<1x2x32xf32> to vector<2x32xf32>
    %370 = vector.shape_cast %360 : vector<2x32xf32> to vector<1x2x32xf32>
    tpu.vector_store %arg11[%c1_98, %c0_99, %c0_100], %370 {strides = array<i32>} : memref<2x2x32xf32, #tpu.memory_space<vmem>>, vector<1x2x32xf32>,
    %c1_101 = arith.constant 1 : index
    %c0_102 = arith.constant 0 : index
    %c0_103 = arith.constant 0 : index
    %371 = vector.load %arg12[%c1_101, %c0_102, %c0_103] : memref<2x2x32xf32, #tpu.memory_space<vmem>>, vector<1x2x32xf32>
    %372 = vector.shape_cast %371 : vector<1x2x32xf32> to vector<2x32xf32>
    %373 = vector.shape_cast %361 : vector<2x32xf32> to vector<1x2x32xf32>
    tpu.vector_store %arg12[%c1_101, %c0_102, %c0_103], %373 {strides = array<i32>} : memref<2x2x32xf32, #tpu.memory_space<vmem>>, vector<1x2x32xf32>,
    %c1_i32_104 = arith.constant 1 : i32
    %374 = arith.cmpi eq, %arg0, %c1_i32_104 : i32
    %375 = arith.extui %374 : i1 to i32
    %c0_i32_105 = arith.constant 0 : i32
    %376 = arith.cmpi ne, %375, %c0_i32_105 : i32
    scf.if %376 {
      %377 = tpu.concatenate %321, %322, %360, %361 in 1 : vector<2x32xf32>, vector<2x32xf32>, vector<2x32xf32>, vector<2x32xf32> -> vector<2x128xf32>
      %c0_106 = arith.constant 0 : index
      %c0_107 = arith.constant 0 : index
      %378 = vector.load %arg10[%c0_106, %c0_107] : memref<2x128xf32, #tpu.memory_space<vmem>>, vector<2x128xf32>
      tpu.vector_store %arg10[%c0_106, %c0_107], %377 {strides = array<i32>} : memref<2x128xf32, #tpu.memory_space<vmem>>, vector<2x128xf32>,
    } else {
    }
    return
  }
  func.func @transform_0(%arg0: i32) -> (i32, i32, i32) {
    %c0_i32 = arith.constant 0 : i32
    %c0_i32_0 = arith.constant 0 : i32
    %c0_i32_1 = arith.constant 0 : i32
    return %arg0, %c0_i32, %c0_i32_0 : i32, i32, i32
  }
  func.func @transform_1(%arg0: i32) -> (i32, i32) {
    %c0_i32 = arith.constant 0 : i32
    %c0_i32_0 = arith.constant 0 : i32
    %c0_i32_1 = arith.constant 0 : i32
    return %c0_i32, %c0_i32_0 : i32, i32
  }
  func.func @transform_2(%arg0: i32) -> (i32, i32) {
    %c0_i32 = arith.constant 0 : i32
    %c0_i32_0 = arith.constant 0 : i32
    %c0_i32_1 = arith.constant 0 : i32
    return %c0_i32, %c0_i32_0 : i32, i32
  }
  func.func @transform_3(%arg0: i32) -> (i32, i32, i32) {
    %c0_i32 = arith.constant 0 : i32
    %c0_i32_0 = arith.constant 0 : i32
    %c0_i32_1 = arith.constant 0 : i32
    %c0_i32_2 = arith.constant 0 : i32
    return %c0_i32, %c0_i32_0, %c0_i32_1 : i32, i32, i32
  }
  func.func @transform_4(%arg0: i32) -> (i32, i32, i32) {
    %c0_i32 = arith.constant 0 : i32
    %c0_i32_0 = arith.constant 0 : i32
    %c0_i32_1 = arith.constant 0 : i32
    %c0_i32_2 = arith.constant 0 : i32
    return %c0_i32, %c0_i32_0, %c0_i32_1 : i32, i32, i32
  }
  func.func @transform_5(%arg0: i32) -> (i32, i32, i32) {
    %c0_i32 = arith.constant 0 : i32
    %c0_i32_0 = arith.constant 0 : i32
    %c0_i32_1 = arith.constant 0 : i32
    %c0_i32_2 = arith.constant 0 : i32
    return %c0_i32, %c0_i32_0, %c0_i32_1 : i32, i32, i32
  }
  func.func @transform_6(%arg0: i32) -> (i32, i32, i32) {
    %c0_i32 = arith.constant 0 : i32
    %c0_i32_0 = arith.constant 0 : i32
    %c0_i32_1 = arith.constant 0 : i32
    %c0_i32_2 = arith.constant 0 : i32
    return %c0_i32, %c0_i32_0, %c0_i32_1 : i32, i32, i32
  }
  func.func @transform_7(%arg0: i32) -> (i32, i32, i32) {
    %c0_i32 = arith.constant 0 : i32
    %c0_i32_0 = arith.constant 0 : i32
    %c0_i32_1 = arith.constant 0 : i32
    %c0_i32_2 = arith.constant 0 : i32
    return %c0_i32, %c0_i32_0, %c0_i32_1 : i32, i32, i32
  }
  func.func @transform_8(%arg0: i32) -> (i32, i32, i32) {
    %c0_i32 = arith.constant 0 : i32
    %c0_i32_0 = arith.constant 0 : i32
    %c0_i32_1 = arith.constant 0 : i32
    %c0_i32_2 = arith.constant 0 : i32
    return %c0_i32, %c0_i32_0, %c0_i32_1 : i32, i32, i32
  }
  func.func @transform_9(%arg0: i32) -> (i32, i32) {
    %c0_i32 = arith.constant 0 : i32
    %c0_i32_0 = arith.constant 0 : i32
    %c0_i32_1 = arith.constant 0 : i32
    return %c0_i32, %c0_i32_0 : i32, i32
  }
}

</mosaic_0001>

<bundles_post_ra>
// kernel: tpu_custom_call.1
= control target key start
LH: loop header
LB: loop body
LE: loop exit
PB: predicated region body
PF: predicated region fallthrough
CT: control target
= control target key end

     0   :  { %s2927_s0 = inlined_call_operand.hbm [shape: f32[8,2,128], index: 0, kind: input, shape index: {}]   ;;  %s2928_s1 = inlined_call_operand.hbm [shape: s32[2,32], index: 1, kind: input, shape index: {}]   ;;  %s2929_s2 = inlined_call_operand.hbm [shape: f32[32,128], index: 2, kind: input, shape index: {}]   ;;  %s2930_s3 = inlined_call_operand.hbm [shape: f32[1,32,128], index: 3, kind: input, shape index: {}]   ;;  %s2931_s4 = inlined_call_operand.hbm [shape: f32[1,32,128], index: 4, kind: input, shape index: {}]   ;;  %s2932_s5 = inlined_call_operand.hbm [shape: f32[1,1,128], index: 5, kind: input, shape index: {}]   ;;  %s2933_s6 = inlined_call_operand.vmem [shape: f32[2,1,32], index: 6, kind: input, shape index: {}]   ;;  %s2934_s7 = inlined_call_operand.vmem [shape: f32[2,1,32], index: 7, kind: input, shape index: {}]   ;;  %s2935_s8 = inlined_call_operand.vmem [shape: f32[2,1,32], index: 8, kind: input, shape index: {}]   ;;  %s2936_s9 = inlined_call_operand.hbm [shape: f32[2,128], index: 9, kind: output, shape index: {}]  }
   0x1   :  { %2937 = sst [smem:[#allocation21_spill]] %s2928_s1 }
   0x2   :  { %14 = vsyncpa [#allocation5], 0 }
   0x3   :  { %16 = vsyncpa [#allocation5 + $0x1], 0 }
   0x4   :  { %17 = vsyncpa [#allocation8], 0 }
   0x5   :  { %18 = vsyncpa [#allocation11], 0 }
   0x6   :  { %19 = vsyncpa [#allocation14], 0 }
   0x7   :  { %20 = vsyncpa [#allocation6], 0  ;;  %s2394_s30 = smov 0   ;;  %s2396_s10 = smov 0  }
   0x8   :  { %s2398_s11 = smov 0   ;;  %s2400_s12 = smov 0  }
   0x9 LB: > { %s2938_s1 = sld [smem:[#allocation21_spill]]  ;;  %s2418_s16 = sadd.s32 4294967295, %s2325_s12   ;;  %s2325_s12 = sphi %s2400_s12, %s2954_s12   ;;  %s2321_s11 = sphi %s2398_s11, %s2953_s11   ;;  %s2317_s10 = sphi %s2396_s10, %s2952_s10   ;;  %s2313_s30 = sphi %s2394_s30, %s2951_s30  }
   0xa   : > { %p1751_p0 = scmp.ge.s32.totalorder %s2325_s12, 1  ;;  %p47_p1 = scmp.eq.s32.totalorder %s2418_s16, 0 }
   0xb   : > { %p246_p2 = scmp.lt.s32.totalorder %s2325_s12, 3  ;;  %p1752_p3 = scmp.ne.s32.totalorder %s2418_s16, 0 }
   0xc   : > { %s2327_s18 = smov [#allocation7]   ;;  %s283_s22 = sshll.u32 %s2930_s3, 4  ;;  %s284_s22 = int_to_ptr.hbm [resolvable:$true] %s283_s22 }
   0xd   : > { %p2424_p4 = pnand %p1751_p0, %p246_p2  ;;  %s260_s19 = sshll.u32 %s2327_s18, 4  ;;  %s261_s19 = int_to_ptr.vmem [resolvable:$true] %s260_s19 }
   0xe   : > { %s269_s26 = sshll.u32 %s2929_s2, 4  ;;  %s2328_s27 = smov [#allocation10]   ;;  %s270_s26 = int_to_ptr.hbm [resolvable:$true] %s269_s26 }
   0xf   : > { %s258_s15 = sshll.u32 %s2938_s1, 4  ;;  %p1844_p5 = pneg %p2424_p4  ;;  %s259_s15 = int_to_ptr.hbm [resolvable:$true] %s258_s15 }
  0x10   : > { %s285_s28 = sshll.u32 %s2328_s27, 4  ;;  %s2329_s29 = smov 128   ;;  %s286_s28 = int_to_ptr.vmem [resolvable:$true] %s285_s28 }
  0x11   : > { %p2435_p6 = pnand %p1844_p5, %p47_p1  ;;  %s2330_s13 = smov 8  }
  0x12   : > { %s297_s20 = sshll.u32 %s2931_s4, 4  ;;  %s2331_s21 = smov [#allocation9]   ;;  %s298_s20 = int_to_ptr.hbm [resolvable:$true] %s297_s20 }
  0x13   : > { %1847 = dma.hbm_to_vmem [thread:$0]  (!%p2435_p6), %s259_s15, 32, %s261_s19, [#allocation8]  }
  0x14   : > { %1853 = dma.hbm_to_vmem [thread:$0]  (!%p2435_p6), %s284_s22, 512, %s286_s28, [#allocation11], %s2329_s29, %s2329_s29, %s2330_s13  }
  0x15   : > { %s271_s24 = sshll.u32 %s2331_s21, 4  ;;  %s2332_s15 = smov [#allocation12]   ;;  %s272_s24 = int_to_ptr.vmem [resolvable:$true] %s271_s24 }
  0x16   : > { %1850 = dma.hbm_to_vmem [thread:$0]  (!%p2435_p6), %s270_s26, 512, %s272_s24, [#allocation8], %s2329_s29, %s2329_s29, %s2330_s13  }
  0x17   : > { %s299_s19 = sshll.u32 %s2332_s15, 4  ;;  %s312_s27 = sshll.u32 %s2932_s5, 4  ;;  %s300_s19 = int_to_ptr.vmem [resolvable:$true] %s299_s19  ;;  %s313_s27 = int_to_ptr.hbm [resolvable:$true] %s312_s27 }
  0x18   : > { %1856 = dma.hbm_to_vmem [thread:$0]  (!%p2435_p6), %s298_s20, 512, %s300_s19, [#allocation11], %s2329_s29, %s2329_s29, %s2330_s13  }
  0x19   : > { %s2333_s28 = smov [#allocation13]   ;;  %s2459_s26 = sadd.s32 1, %s2325_s12  }
  0x1a   : > { %s314_s14 = sshll.u32 %s2333_s28, 4  ;;  %s30_s18 = ssub.s32 %s2325_s12, %s2459_s26  ;;  %s315_s14 = int_to_ptr.vmem [resolvable:$true] %s314_s14 }
  0x1b   : > { %1859 = dma.hbm_to_vmem [thread:$0]  (!%p2435_p6), %s313_s27, 16, %s315_s14, [#allocation14]  }
  0x1c   : > { %s33_s21 = sadd.s32 1, %s2321_s11  ;;  %p31_p7 = scmp.eq.s32.totalorder %s30_s18, 0 }
  0x1d   : > { %p40_p8 = scmp.ne.s32.totalorder %s2321_s11, %s2317_s10  ;;  %p41_p9 = scmp.eq.s32.totalorder %s2325_s12, 0 }
  0x1e   : > { %p46_p10 = scmp.ne.s32.totalorder %s2317_s10, %s2313_s30  ;;  %p1869_p13 = scmp.lt.s32.totalorder %s2325_s12, 2 }
  0x1f   : > { %s2470_s24 = scalar_select %p31_p7, %s2321_s11, %s33_s21  }
  0x20   : > { %p42_p11 = por %p41_p9, %p40_p8  ;;  %p2474_p12 = por %p47_p1, %p46_p10 }
  0x21   : > { %s334_s23 = sand.u32 1, %s2321_s11   ;;  %s1817_s20 = sshll.u32 %s2325_s12, 3 }
  0x22   : > { %s1758_s13 = sshll.u32 %s334_s23, 3  ;;  %s343_s22 = scalar_lea.hbm %s2927_s0, %s1817_s20 }
  0x23   : > { %s338_s25 = scalar_lea.vmem [#allocation4], %s1758_s13  ;;  %s344_s28 = sshll.u32 %s343_s22, 4  ;;  %s345_s28 = int_to_ptr.hbm [resolvable:$true] %s344_s28 }
  0x24   : > { %s346_s27 = sshll.u32 %s338_s25, 4  ;;  %p2484_p0 = pnand %p1869_p13, %p42_p11  ;;  %s347_s27 = int_to_ptr.vmem [resolvable:$true] %s346_s27 }
  0x25   : > { %s335_s14 = scalar_lea.sflag [#allocation5], %s334_s23  ;;  %s2217_s18 = sshra.s32 %s345_s28, 4  ;;  %s2218_s18 = int_to_ptr.hbm [resolvable:$true] %s2217_s18 }
  0x26   : > { %s2219_s21 = scalar_lea.hbm %s2218_s18, 8  ;;  %p2221_p5 = pneg %p2484_p0 }
  0x27   : > { %p2220_p2 = scmp.ne.s32.totalorder %s2218_s18, %s2219_s21  ;;  %s2224_s20 = scalar_lea.hbm %s2927_s0, 16 }
  0x28   : > { %p2225_p8 = scmp.lt.s32.totalorder %s2218_s18, %s2927_s0  ;;  %p2226_p9 = scmp.lt.s32.totalorder %s2224_s20, %s2219_s21 }
  0x29   : > { %p2222_p6 = pnand %p2221_p5, %p2220_p2 }
  0x2a   : > { %p2227_p10 = por %p2226_p9, %p2225_p8 }
  0x2b   : > { %p2223_p7 = pneg %p2222_p6 }
  0x2d   : > { %p2228_p11 = pnand %p2227_p10, %p2223_p7 }
  0x2f   : > { %2231 = shalt.err (!%p2228_p11)
}
  0x30   : > { %s2334_s23 = smov 32   ;;  %s2335_s22 = smov 2  }
  0x31   : > { %1863 = dma.hbm_to_vmem [thread:$0]  (!%p2484_p0), %s345_s28, 128, %s347_s27, %s335_s14, %s2334_s23, %s2334_s23, %s2335_s22  }
  0x32   : > { %358 = sbr.rel (%p2424_p4) target bundleno = 3306 (0xcea), region = 56  ;;  %s360_s25 = sand.u32 (!%p2424_p4), 1, %s2317_s10  }
  0x33   : > { %s1762_s12 = sshll.u32 (!%p2424_p4), %s360_s25, 3  ;;  %s361_s13 = scalar_lea.sflag (!%p2424_p4), [#allocation5], %s360_s25 }
  0x34   : > { %s2501_s1 = scalar_lea.vmem (!%p2424_p4), [#allocation4], %s1762_s12 }
  0x37   : > { %2292 = dma.done.wait (%p2474_p12), %s361_s13, 128  }
  0x38   : > { %2294 = vsyncadd (%p2474_p12), %s361_s13, 4294967168 }
  0x39   : > { %2296 = dma.done.wait (%p47_p1), [#allocation8], 544  }
  0x3a   : > { %2298 = vsyncadd (%p47_p1), [#allocation8], 4294966752 }
  0x3b   : > { %2300 = dma.done.wait (%p47_p1), [#allocation11], 1024  }
  0x3c   : > { %2302 = vsyncadd (%p47_p1), [#allocation11], 4294966272 }
  0x3d   : > { %2304 = dma.done.wait (%p47_p1), [#allocation14], 16  }
  0x3e   : > { %2306 = vsyncadd (%p47_p1), [#allocation14], 4294967280  ;;  %424 = sbr.rel (%p1752_p3) target bundleno = 72 (0x48), region = 84 }
  0x43   : > { %vm425_vm0 = vcmask 254976   ;;  %v2336_v0 = vmov 0.0  }
  0x44   : > { %426 = vst.msk [vmem:[#allocation2] sm:$0x3] %vm425_vm0, %v2336_v0 }
  0x45   : > { %427 = vst.msk [vmem:[#allocation2 + $0x2] sm:$0x3] %vm425_vm0, %v2336_v0 }
  0x46   : > { %428 = vst.msk [vmem:[#allocation3] sm:$0x3] %vm425_vm0, %v2336_v0 }
  0x47   : > { %429 = vst.msk [vmem:[#allocation3 + $0x2] sm:$0x3] %vm425_vm0, %v2336_v0 }
  0x48 PF: > { %v2521_v1 = vld [vmem:[#allocation9 + $0x18] sm:$0xff]  ;;  %v2523_v2 = vld [vmem:[#allocation9 + $0x10] sm:$0xff]  ;;  %v2527_v3 = vld [vmem:[#allocation9 + $0x8] sm:$0xff]  ;;  %vm482_vm1 = vcmask 261120   ;;  %s2337_s17 = smov 64   ;;  %s2338_s29 = smov 96  }
  0x49   : > { %498 = vmatpush.msra.mxu0 %v2521_v1  ;;  %787 = vmatpush.msra.mxu3 %v2521_v1  ;;  %v2529_v4 = vld [vmem:[#allocation9] sm:$0xff]  ;;  %v481_v7 = vld [vmem:[%s2501_s1] sm:$0x3]  ;;  %s2339_s20 = smov 32   ;;  %s2589_s23 = sshll.u32 %s2418_s16, 2 }
  0x4a   : > { %v2553_v11 = vld [vmem:[%s2934_s7] ss:$0 sm:$0xff]  ;;  %v2581_v54 = vld [vmem:[%s2934_s7 + $0x1] ss:$0 sm:$0xff]  ;;  %v2592_v60 = vld [vmem:[#allocation7] sm:$0x3]  ;;  %v479_v61 = vstv %s2589_s23 }
  0x4b   : > { %499 = vmatpush.msra.mxu0 %v2523_v2  ;;  %788 = vmatpush.msra.mxu3 %v2523_v2  ;;  %v2541_v6 = vld [vmem:[#allocation2] sm:$0x3]  ;;  %vm2596_vm10 = vcmp.gt.s32.totalorder %v2592_v60, %v479_v61  ;;  %s767_s27 = sadd.s32 1, %s2589_s23  ;;  %s1050_s28 = sadd.s32 2, %s2589_s23 }
  0x4c   : > { %555 = vrot.lane.b32.xlu1 %v2541_v6, %s2337_s17  ;;  %v528_v12 = vmul.f32 %v2553_v11, %v2541_v6  ;;  %v2561_v13 = vld [vmem:[%s2933_s6] ss:$0 sm:$0xff]  ;;  %v2583_v55 = vld [vmem:[#allocation2 + $0x2] sm:$0x3]  ;;  %s1333_s19 = sadd.s32 3, %s2589_s23  ;;  %p1812_p1 = scmp.ne.s32.totalorder %s2418_s16, 1 }
  0x4d   : > { %500 = vmatpush.msra.mxu0 %v2527_v3  ;;  %v2534_v5 = vld [vmem:[#allocation3] sm:$0x3]  ;;  %789 = vmatpush.msra.mxu3 %v2527_v3  ;;  %v507_v14 = vmul.f32 %v2561_v13, %v2541_v6  ;;  %v1928_v23 = vld [vmem:[%s2935_s8] ss:$0 sm:$0xff]  ;;  %v682_v56 = vmul.f32 %v2581_v54, %v2583_v55  ;;  %s2342_s25 = smov (!%p1812_p1), 64  }
  0x4e   : > { %569 = vrot.lane.b32.xlu2 %v1928_v23, %s2337_s17  ;;  %v436_v23 = vld [vmem:[#allocation10 + $0x10] sm:$0xff] }
  0x4f   : > { %501 = vmatpush.msra.mxu0 %v2529_v4  ;;  %790 = vmatpush.msra.mxu3 %v2529_v4 }
  0x50   : > { %1773 = vmatmul.msk.f32.vlgmr.msra.gmra.mxu0 %vm482_vm1, %v2534_v5 }
  0xa8   : > { %v2572_v50 = vpop.permute.xlu2 %569 }
  0xbe   : > { %v556_v44 = vpop.permute.xlu1 %555 }
  0xcd   : > { %v503_v8 = vpop.f32.mrf.mxu0 }
  0xce   : > { %v2546_v9 = vadd.f32 %v503_v8, %v481_v7 }
  0xd0   : > { %1933 = vtanh.f32 %v2546_v9  ;;  %v508_v15 = vadd.f32 %v507_v14, %v2546_v9 }
  0xd2   : > { %v1774_v16 = vmul.f32 -1.442695, %v508_v15 }
  0xd4   : > { %1935 = vpow2.f32 %v1774_v16 }
  0xd6   : > { %v1934_v10 = vpop.eup %1933 }
  0xd7   : > { %560 = vrot.lane.b32.xlu0 %v1934_v10, %s2338_s29 }
  0xda   : > { %v1936_v17 = vpop.eup %1935 }
  0xdb   : > { %v512_v18 = vadd.f32 1.0, %v1936_v17 }
  0xdd   : > { %1937 = vrcp.f32 %v512_v18  ;;  %v524_v25 = vand.u32 2147483648, %v512_v18  ;;  %vm518_vm3 = vweird.f32 %v512_v18  ;;  %v522_v26 = vand.u32 2147483647, %v512_v18 }
  0xdf   : > { %530 = vrot.lane.b32.xlu0 %v528_v12, %s2337_s17  ;;  %v525_v28 = vor.u32 1.1754944e-38, %v524_v25  ;;  %vm523_vm5 = vcmp.eq.f32.partialorder %v522_v26, 8.507059e+37  ;;  %v441_v25 = vld [vmem:[#allocation12 + $0x18] sm:$0xff]  ;;  %v434_v26 = vld [vmem:[#allocation10] sm:$0xff] }
  0xe0   : > { %629 = vmatpush.msra.mxu1 %v441_v25  ;;  %915 = vmatpush.msrb.mxu0 %v441_v25 }
  0xe1   : > { %1198 = vmatpush.msrb.mxu3 %v441_v25 }
  0xe3   : > { %v1938_v19 = vpop.eup %1937 }
  0xe4   : > { %v514_v20 = vmul.f32 %v1938_v19, %v512_v18  ;;  %vm519_vm2 = vweird.f32 %v1938_v19 }
  0xe5   : > { %vm520_vm4 = vmor %vm518_vm3, %vm519_vm2 }
  0xe6   : > { %v515_v21 = vsub.f32 1.0, %v514_v20 }
  0xe8   : > { %v516_v22 = vmul.f32 %v1938_v19, %v515_v21 }
  0xea   : > { %v517_v24 = vadd.f32 %v1938_v19, %v516_v22  ;;  %v437_v22 = vld [vmem:[#allocation10 + $0x18] sm:$0xff] }
  0xeb   : > { %652 = vmatpush.msra.mxu2 %v437_v22 }
  0xec   : > { %v521_v27 = vsel %vm520_vm4, %v1938_v19, %v517_v24  ;;  %v435_v24 = vld [vmem:[#allocation10 + $0x8] sm:$0xff] }
  0xed   : > { %v526_v30 = vsel %vm523_vm5, %v525_v28, %v521_v27  ;;  %653 = vmatpush.msra.mxu2 %v436_v23  ;;  %v440_v27 = vld [vmem:[#allocation12 + $0x10] sm:$0xff]  ;;  %v439_v28 = vld [vmem:[#allocation12 + $0x8] sm:$0xff] }
  0xee   : > { %630 = vmatpush.msra.mxu1 %v440_v27  ;;  %916 = vmatpush.msrb.mxu0 %v440_v27 }
  0xef   : > { %654 = vmatpush.msra.mxu2 %v435_v24  ;;  %1199 = vmatpush.msrb.mxu3 %v440_v27 }
  0xf0   : > { %631 = vmatpush.msra.mxu1 %v439_v28  ;;  %917 = vmatpush.msrb.mxu0 %v439_v28 }
  0xf1   : > { %655 = vmatpush.msra.mxu2 %v434_v26  ;;  %1200 = vmatpush.msrb.mxu3 %v439_v28 }
  0xf3   : > { %1070 = vmatpush.msrb.mxu2 %v2521_v1 }
  0xf5   : > { %1071 = vmatpush.msrb.mxu2 %v2523_v2 }
  0xf7   : > { %1072 = vmatpush.msrb.mxu2 %v2527_v3 }
  0xf9   : > { %1073 = vmatpush.msrb.mxu2 %v2529_v4 }
 0x149   : > { %v561_v29 = vpop.permute.xlu0 %560 }
 0x14a   : > { %v563_v31 = vmul.f32 %v561_v29, %v526_v30  ;;  %v438_v29 = vld [vmem:[#allocation12] sm:$0xff]  ;;  %v2610_v30 = vld [vmem:[#allocation3 + $0x2] sm:$0x3] }
 0x14b   : > { %632 = vmatpush.msra.mxu1 %v438_v29  ;;  %918 = vmatpush.msrb.mxu0 %v438_v29 }
 0x14c   : > { %565 = vrot.lane.b32.xlu1 %v563_v31, %s2337_s17  ;;  %1777 = vmatmul.msk.f32.vlgmr.msra.gmra.mxu1 %vm482_vm1, %v2610_v30 }
 0x14d   : > { %938 = vmatpush.msrb.mxu1 %v437_v22  ;;  %1221 = vmatpush.msra.mxu0 %v437_v22 }
 0x14e   : > { %1201 = vmatpush.msrb.mxu3 %v438_v29 }
 0x14f   : > { %939 = vmatpush.msrb.mxu1 %v436_v23  ;;  %1222 = vmatpush.msra.mxu0 %v436_v23 }
 0x151   : > { %v531_v32 = vpop.permute.xlu0 %530  ;;  %940 = vmatpush.msrb.mxu1 %v435_v24  ;;  %1223 = vmatpush.msra.mxu0 %v435_v24 }
 0x152   : > { %v533_v33 = vadd.f32 %v531_v32, %v2546_v9 }
 0x153   : > { %941 = vmatpush.msrb.mxu1 %v434_v26  ;;  %1224 = vmatpush.msra.mxu0 %v434_v26 }
 0x154   : > { %v1775_v34 = vmul.f32 -1.442695, %v533_v33 }
 0x155   : > { %1353 = vmatpush.msra.mxu1 %v2521_v1 }
 0x156   : > { %1939 = vpow2.f32 %v1775_v34 }
 0x157   : > { %1354 = vmatpush.msra.mxu1 %v2523_v2  ;;  %v1782_v2 = vld [vmem:[%s2501_s1 + $0x2] sm:$0x3] }
 0x159   : > { %1355 = vmatpush.msra.mxu1 %v2527_v3  ;;  %v2631_v3 = vld [vmem:[#allocation13] ss:$0 sm:$0xff] }
 0x15b   : > { %1356 = vmatpush.msra.mxu1 %v2529_v4 }
 0x15c   : > { %v1940_v35 = vpop.eup %1939 }
 0x15d   : > { %v537_v36 = vadd.f32 1.0, %v1940_v35 }
 0x15f   : > { %1941 = vrcp.f32 %v537_v36  ;;  %v549_v42 = vand.u32 2147483648, %v537_v36  ;;  %vm543_vm7 = vweird.f32 %v537_v36  ;;  %v547_v43 = vand.u32 2147483647, %v537_v36 }
 0x161   : > { %v550_v46 = vor.u32 1.1754944e-38, %v549_v42  ;;  %vm548_vm9 = vcmp.eq.f32.partialorder %v547_v43, 8.507059e+37 }
 0x165   : > { %v1942_v37 = vpop.eup %1941 }
 0x166   : > { %v539_v38 = vmul.f32 %v1942_v37, %v537_v36  ;;  %vm544_vm6 = vweird.f32 %v1942_v37 }
 0x167   : > { %vm545_vm8 = vmor %vm543_vm7, %vm544_vm6 }
 0x168   : > { %v540_v39 = vsub.f32 1.0, %v539_v38 }
 0x16a   : > { %v541_v40 = vmul.f32 %v1942_v37, %v540_v39 }
 0x16c   : > { %v542_v41 = vadd.f32 %v1942_v37, %v541_v40  ;;  %v2650_v40 = vld [vmem:[%s2933_s6 + $0x1] ss:$0 sm:$0xff] }
 0x16d   : > { %v661_v42 = vmul.f32 %v2650_v40, %v2583_v55 }
 0x16e   : > { %v546_v45 = vsel %vm545_vm8, %v1942_v37, %v542_v41 }
 0x16f   : > { %v551_v47 = vsel %vm548_vm9, %v550_v46, %v546_v45 }
 0x170   : > { %v558_v48 = vmul.f32 %v556_v44, %v551_v47 }
 0x1be   : > { %v566_v49 = vpop.permute.xlu1 %565 }
 0x1bf   : > { %v568_v51 = vadd.f32 %v566_v49, %v558_v48 }
 0x1c1   : > { %1943 = vtanh.f32 %v568_v51  ;;  %v572_v52 = vmul.f32 %v2572_v50, %v568_v51 }
 0x1c3   : > { %574 = vrot.lane.b32.xlu2 %v572_v52, %s2339_s20 }
 0x1c7   : > { %v1944_v53 = vpop.eup %1943 }
 0x1c8   : > { %599 = vrot.lane.b32.xlu0 %v1944_v53, %s2339_s20 }
 0x1c9   : > { %v634_v1 = vpop.f32.mrf.mxu1 }
 0x1cb   : > { %604 = vrot.lane.b32.xlu2 %v568_v51, %s2337_s17 }
 0x1d3   : > { %684 = vrot.lane.b32.xlu2 %v682_v56, %s2337_s17 }
 0x21d   : > { %v575_v57 = vpop.permute.xlu2 %574 }
 0x21e   : > { %v577_v58 = vadd.f32 %v575_v57, %v2546_v9 }
 0x220   : > { %v1776_v59 = vmul.f32 -1.442695, %v577_v58 }
 0x222   : > { %1945 = vpow2.f32 %v1776_v59 }
 0x225   : > { %v605_v63 = vpop.permute.xlu2 %604 }
 0x226   : > { %v2603_v0 = vsel %vm2596_vm10, %v605_v63, %v2541_v6 }
 0x227   : > { %844 = vrot.lane.b32.xlu2 %v2603_v0, %s2337_s17  ;;  %v817_v39 = vmul.f32 %v2553_v11, %v2603_v0  ;;  %v796_v41 = vmul.f32 %v2561_v13, %v2603_v0 }
 0x228   : > { %v1946_v7 = vpop.eup %1945 }
 0x229   : > { %v581_v8 = vadd.f32 1.0, %v1946_v7  ;;  %v1932_v7 = vld [vmem:[%s2935_s8 + $0x1] ss:$0 sm:$0xff] }
 0x22b   : > { %1947 = vrcp.f32 %v581_v8  ;;  %v593_v14 = vand.u32 2147483648, %v581_v8  ;;  %v591_v16 = vand.u32 2147483647, %v581_v8  ;;  %vm587_vm12 = vweird.f32 %v581_v8 }
 0x22d   : > { %v594_v18 = vor.u32 1.1754944e-38, %v593_v14  ;;  %vm592_vm14 = vcmp.eq.f32.partialorder %v591_v16, 8.507059e+37 }
 0x22f   : > { %723 = vrot.lane.b32.xlu2 %v1932_v7, %s2337_s17 }
 0x231   : > { %v1948_v9 = vpop.eup %1947 }
 0x232   : > { %v583_v10 = vmul.f32 %v1948_v9, %v581_v8  ;;  %vm588_vm11 = vweird.f32 %v1948_v9 }
 0x233   : > { %vm589_vm13 = vmor %vm587_vm12, %vm588_vm11 }
 0x234   : > { %v584_v12 = vsub.f32 1.0, %v583_v10 }
 0x236   : > { %v585_v15 = vmul.f32 %v1948_v9, %v584_v12 }
 0x238   : > { %v586_v17 = vadd.f32 %v1948_v9, %v585_v15 }
 0x23a   : > { %v600_v19 = vpop.permute.xlu0 %599  ;;  %v590_v6 = vsel %vm589_vm13, %v1948_v9, %v586_v17 }
 0x23b   : > { %v595_v20 = vsel %vm592_vm14, %v594_v18, %v590_v6 }
 0x23c   : > { %v602_v21 = vmul.f32 %v600_v19, %v595_v20 }
 0x23e   : > { %609 = vrot.lane.b32.xlu1 %v602_v21, %s2339_s20 }
 0x2b0   : > { %v610_v31 = vpop.permute.xlu1 %609 }
 0x2b1   : > { %v613_v32 = vsel %vm2596_vm10, %v610_v31, 0.0  ;;  %v2625_v33 = vsel %vm2596_vm10, %v610_v31, %v2534_v5 }
 0x2b2   : > { %1778 = vmatmul.msk.f32.vlgmr.msra.gmra.mxu2 %vm482_vm1, %v613_v32  ;;  %1783 = vmatmul.msk.f32.vlgmr.msra.gmra.mxu3 %vm482_vm1, %v2625_v33 }
 0x2b3   : > { %1481 = vmatpush.msra.mxu2 %v441_v25  ;;  %1504 = vmatpush.msra.mxu3 %v437_v22 }
 0x2b5   : > { %1482 = vmatpush.msra.mxu2 %v440_v27  ;;  %1505 = vmatpush.msra.mxu3 %v436_v23  ;;  %v685_v27 = vpop.permute.xlu2 %684 }
 0x2b7   : > { %1483 = vmatpush.msra.mxu2 %v439_v28  ;;  %1506 = vmatpush.msra.mxu3 %v435_v24 }
 0x2b9   : > { %1484 = vmatpush.msra.mxu2 %v438_v29  ;;  %1507 = vmatpush.msra.mxu3 %v434_v26 }
 0x335   : > { %v657_v4 = vpop.f32.mrf.mxu2  ;;  %v792_v5 = vpop.f32.mrf.mxu3 }
 0x336   : > { %v658_v34 = vadd.f32 %v657_v4, %v634_v1  ;;  %v2633_v35 = vadd.f32 %v1782_v2, %v792_v5 }
 0x338   : > { %v2636_v36 = vadd.f32 %v2631_v3, %v658_v34  ;;  %1949 = vtanh.f32 %v2633_v35  ;;  %v797_v43 = vadd.f32 %v796_v41, %v2633_v35 }
 0x33a   : > { %1951 = vtanh.f32 %v2636_v36  ;;  %v662_v44 = vadd.f32 %v661_v42, %v2636_v36  ;;  %v1784_v45 = vmul.f32 -1.442695, %v797_v43  ;;  %v687_v28 = vadd.f32 %v685_v27, %v2636_v36 }
 0x33c   : > { %v1779_v46 = vmul.f32 -1.442695, %v662_v44  ;;  %1953 = vpow2.f32 %v1784_v45  ;;  %v1780_v31 = vmul.f32 -1.442695, %v687_v28 }
 0x33e   : > { %v1950_v37 = vpop.eup %1949  ;;  %1955 = vpow2.f32 %v1779_v46 }
 0x33f   : > { %849 = vrot.lane.b32.xlu1 %v1950_v37, %s2338_s29 }
 0x340   : > { %v1952_v38 = vpop.eup %1951 }
 0x341   : > { %714 = vrot.lane.b32.xlu0 %v1952_v38, %s2338_s29 }
 0x342   : > { %v1954_v47 = vpop.eup %1953 }
 0x343   : > { %v801_v49 = vadd.f32 1.0, %v1954_v47 }
 0x344   : > { %v1956_v48 = vpop.eup %1955 }
 0x345   : > { %v666_v51 = vadd.f32 1.0, %v1956_v48  ;;  %1957 = vrcp.f32 %v801_v49  ;;  %v813_v9 = vand.u32 2147483648, %v801_v49  ;;  %vm807_vm0 = vweird.f32 %v801_v49 }
 0x346   : > { %v811_v10 = vand.u32 2147483647, %v801_v49 }
 0x347   : > { %709 = vrot.lane.b32.xlu1 %v2583_v55, %s2337_s17  ;;  %1959 = vrcp.f32 %v666_v51  ;;  %v678_v14 = vand.u32 2147483648, %v666_v51  ;;  %vm672_vm4 = vweird.f32 %v666_v51  ;;  %v676_v16 = vand.u32 2147483647, %v666_v51 }
 0x348   : > { %v814_v17 = vor.u32 1.1754944e-38, %v813_v9  ;;  %vm812_vm6 = vcmp.eq.f32.partialorder %v811_v10, 8.507059e+37 }
 0x349   : > { %819 = vrot.lane.b32.xlu0 %v817_v39, %s2337_s17  ;;  %v679_v20 = vor.u32 1.1754944e-38, %v678_v14  ;;  %vm677_vm7 = vcmp.eq.f32.partialorder %v676_v16, 8.507059e+37 }
 0x34b   : > { %v1958_v52 = vpop.eup %1957 }
 0x34c   : > { %v803_v56 = vmul.f32 %v1958_v52, %v801_v49  ;;  %vm808_vm15 = vweird.f32 %v1958_v52 }
 0x34d   : > { %v1960_v53 = vpop.eup %1959  ;;  %vm809_vm3 = vmor %vm807_vm0, %vm808_vm15 }
 0x34e   : > { %v668_v57 = vmul.f32 %v1960_v53, %v666_v51  ;;  %v804_v58 = vsub.f32 1.0, %v803_v56  ;;  %vm673_vm2 = vweird.f32 %v1960_v53  ;;  %v845_v51 = vpop.permute.xlu2 %844 }
 0x34f   : > { %vm674_vm5 = vmor %vm672_vm4, %vm673_vm2 }
 0x350   : > { %v669_v59 = vsub.f32 1.0, %v668_v57  ;;  %v805_v61 = vmul.f32 %v1958_v52, %v804_v58 }
 0x352   : > { %v670_v63 = vmul.f32 %v1960_v53, %v669_v59  ;;  %v806_v8 = vadd.f32 %v1958_v52, %v805_v61 }
 0x354   : > { %v671_v12 = vadd.f32 %v1960_v53, %v670_v63  ;;  %v810_v15 = vsel %vm809_vm3, %v1958_v52, %v806_v8 }
 0x355   : > { %v815_v6 = vsel %vm812_vm6, %v814_v17, %v810_v15 }
 0x356   : > { %v675_v18 = vsel %vm674_vm5, %v1960_v53, %v671_v12  ;;  %v2668_v12 = vpop.permute.xlu2 %723 }
 0x357   : > { %v680_v23 = vsel %vm677_vm7, %v679_v20, %v675_v18 }
 0x3b1   : > { %v850_v19 = vpop.permute.xlu1 %849 }
 0x3b2   : > { %v852_v21 = vmul.f32 %v850_v19, %v815_v6 }
 0x3b3   : > { %v715_v22 = vpop.permute.xlu0 %714 }
 0x3b4   : > { %v717_v24 = vmul.f32 %v715_v22, %v680_v23  ;;  %854 = vrot.lane.b32.xlu1 %v852_v21, %s2337_s17 }
 0x3b6   : > { %719 = vrot.lane.b32.xlu0 %v717_v24, %s2337_s17 }
 0x3b9   : > { %v710_v47 = vpop.permute.xlu1 %709 }
 0x3bb   : > { %v820_v25 = vpop.permute.xlu0 %819 }
 0x3bc   : > { %v822_v26 = vadd.f32 %v820_v25, %v2633_v35 }
 0x3be   : > { %v1785_v29 = vmul.f32 -1.442695, %v822_v26 }
 0x3c0   : > { %1961 = vpow2.f32 %v1785_v29 }
 0x3c1   : > { %1963 = vpow2.f32 %v1780_v31 }
 0x3c6   : > { %v1962_v32 = vpop.eup %1961 }
 0x3c7   : > { %v826_v1 = vadd.f32 1.0, %v1962_v32  ;;  %v1964_v2 = vpop.eup %1963 }
 0x3c8   : > { %v691_v4 = vadd.f32 1.0, %v1964_v2 }
 0x3c9   : > { %1965 = vrcp.f32 %v826_v1  ;;  %v838_v45 = vand.u32 2147483648, %v826_v1  ;;  %vm832_vm9 = vweird.f32 %v826_v1  ;;  %v836_v46 = vand.u32 2147483647, %v826_v1 }
 0x3ca   : > { %1967 = vrcp.f32 %v691_v4  ;;  %v703_v52 = vand.u32 2147483648, %v691_v4  ;;  %vm697_vm13 = vweird.f32 %v691_v4  ;;  %v701_v56 = vand.u32 2147483647, %v691_v4 }
 0x3cb   : > { %v839_v53 = vor.u32 1.1754944e-38, %v838_v45  ;;  %vm837_vm14 = vcmp.eq.f32.partialorder %v836_v46, 8.507059e+37 }
 0x3cc   : > { %v704_v59 = vor.u32 1.1754944e-38, %v703_v52  ;;  %vm702_vm0 = vcmp.eq.f32.partialorder %v701_v56, 8.507059e+37 }
 0x3cf   : > { %v1966_v5 = vpop.eup %1965 }
 0x3d0   : > { %v828_v34 = vmul.f32 %v1966_v5, %v826_v1  ;;  %v1968_v37 = vpop.eup %1967  ;;  %vm833_vm8 = vweird.f32 %v1966_v5 }
 0x3d1   : > { %v693_v38 = vmul.f32 %v1968_v37, %v691_v4  ;;  %vm834_vm11 = vmor %vm832_vm9, %vm833_vm8  ;;  %vm698_vm12 = vweird.f32 %v1968_v37 }
 0x3d2   : > { %v829_v39 = vsub.f32 1.0, %v828_v34  ;;  %vm699_vm15 = vmor %vm697_vm13, %vm698_vm12 }
 0x3d3   : > { %v694_v41 = vsub.f32 1.0, %v693_v38 }
 0x3d4   : > { %v830_v42 = vmul.f32 %v1966_v5, %v829_v39 }
 0x3d5   : > { %v695_v43 = vmul.f32 %v1968_v37, %v694_v41 }
 0x3d6   : > { %v831_v44 = vadd.f32 %v1966_v5, %v830_v42 }
 0x3d7   : > { %v696_v48 = vadd.f32 %v1968_v37, %v695_v43 }
 0x3d8   : > { %v835_v49 = vsel %vm834_vm11, %v1966_v5, %v831_v44 }
 0x3d9   : > { %v840_v57 = vsel %vm837_vm14, %v839_v53, %v835_v49  ;;  %v700_v58 = vsel %vm699_vm15, %v1968_v37, %v696_v48 }
 0x3da   : > { %v847_v61 = vmul.f32 %v845_v51, %v840_v57  ;;  %v705_v63 = vsel %vm702_vm0, %v704_v59, %v700_v58  ;;  %v768_v57 = vstv %s767_s27 }
 0x3db   : > { %v712_v8 = vmul.f32 %v710_v47, %v705_v63  ;;  %vm2695_vm11 = vcmp.gt.s32.totalorder %v2592_v60, %v768_v57 }
 0x426   : > { %v855_v7 = vpop.permute.xlu1 %854 }
 0x427   : > { %v2666_v9 = vadd.f32 %v855_v7, %v847_v61 }
 0x428   : > { %v720_v10 = vpop.permute.xlu0 %719 }
 0x429   : > { %v722_v14 = vadd.f32 %v720_v10, %v712_v8  ;;  %v858_v15 = vmul.f32 %v2666_v9, %v2572_v50  ;;  %v1792_v8 = vld [vmem:[%s2501_s1 + $0x4] sm:$0x3] }
 0x42b   : > { %1969 = vtanh.f32 %v722_v14  ;;  %860 = vrot.lane.b32.xlu1 %v858_v15, %s2339_s20  ;;  %v726_v16 = vmul.f32 %v2668_v12, %v722_v14 }
 0x42c   : > { %1971 = vtanh.f32 %v2666_v9 }
 0x42d   : > { %728 = vrot.lane.b32.xlu0 %v726_v16, %s2339_s20 }
 0x431   : > { %v1970_v17 = vpop.eup %1969 }
 0x432   : > { %753 = vrot.lane.b32.xlu2 %v1970_v17, %s2339_s20  ;;  %v1972_v18 = vpop.eup %1971 }
 0x435   : > { %885 = vrot.lane.b32.xlu0 %v1972_v18, %s2339_s20 }
 0x43d   : > { %758 = vrot.lane.b32.xlu0 %v722_v14, %s2337_s17 }
 0x48c   : > { %v754_v48 = vpop.permute.xlu2 %753 }
 0x49d   : > { %v861_v19 = vpop.permute.xlu1 %860 }
 0x49e   : > { %v863_v6 = vadd.f32 %v861_v19, %v2633_v35 }
 0x49f   : > { %v729_v20 = vpop.permute.xlu0 %728 }
 0x4a0   : > { %v1786_v21 = vmul.f32 -1.442695, %v863_v6  ;;  %v731_v22 = vadd.f32 %v729_v20, %v2636_v36 }
 0x4a2   : > { %1973 = vpow2.f32 %v1786_v21  ;;  %v1781_v23 = vmul.f32 -1.442695, %v731_v22 }
 0x4a4   : > { %1975 = vpow2.f32 %v1781_v23 }
 0x4a7   : > { %v886_v44 = vpop.permute.xlu0 %885 }
 0x4a8   : > { %v1974_v24 = vpop.eup %1973 }
 0x4a9   : > { %v867_v25 = vadd.f32 1.0, %v1974_v24 }
 0x4aa   : > { %v1976_v26 = vpop.eup %1975 }
 0x4ab   : > { %1977 = vrcp.f32 %v867_v25  ;;  %v735_v27 = vadd.f32 1.0, %v1976_v26  ;;  %v879_v2 = vand.u32 2147483648, %v867_v25  ;;  %v877_v4 = vand.u32 2147483647, %v867_v25 }
 0x4ac   : > { %vm873_vm3 = vweird.f32 %v867_v25 }
 0x4ad   : > { %1979 = vrcp.f32 %v735_v27  ;;  %v747_v36 = vand.u32 2147483648, %v735_v27  ;;  %v745_v38 = vand.u32 2147483647, %v735_v27  ;;  %v880_v39 = vor.u32 1.1754944e-38, %v879_v2 }
 0x4ae   : > { %vm878_vm6 = vcmp.eq.f32.partialorder %v877_v4, 8.507059e+37  ;;  %vm741_vm7 = vweird.f32 %v735_v27 }
 0x4af   : > { %v748_v45 = vor.u32 1.1754944e-38, %v747_v36  ;;  %vm746_vm9 = vcmp.eq.f32.partialorder %v745_v38, 8.507059e+37  ;;  %v759_v52 = vpop.permute.xlu0 %758 }
 0x4b0   : > { %v2688_v53 = vsel %vm2596_vm10, %v759_v52, %v2583_v55 }
 0x4b1   : > { %v1978_v28 = vpop.eup %1977  ;;  %v968_v56 = vmul.f32 %v2581_v54, %v2688_v53  ;;  %v947_v6 = vmul.f32 %v2650_v40, %v2688_v53 }
 0x4b2   : > { %v869_v29 = vmul.f32 %v1978_v28, %v867_v25  ;;  %vm874_vm2 = vweird.f32 %v1978_v28 }
 0x4b3   : > { %v1980_v31 = vpop.eup %1979  ;;  %vm875_vm5 = vmor %vm873_vm3, %vm874_vm2 }
 0x4b4   : > { %v737_v32 = vmul.f32 %v1980_v31, %v735_v27  ;;  %v870_v1 = vsub.f32 1.0, %v869_v29  ;;  %vm742_vm4 = vweird.f32 %v1980_v31 }
 0x4b5   : > { %vm743_vm8 = vmor %vm741_vm7, %vm742_vm4 }
 0x4b6   : > { %v871_v35 = vmul.f32 %v1978_v28, %v870_v1  ;;  %v738_v5 = vsub.f32 1.0, %v737_v32 }
 0x4b8   : > { %v872_v34 = vadd.f32 %v1978_v28, %v871_v35  ;;  %v739_v37 = vmul.f32 %v1980_v31, %v738_v5 }
 0x4ba   : > { %v876_v41 = vsel %vm875_vm5, %v1978_v28, %v872_v34  ;;  %v740_v42 = vadd.f32 %v1980_v31, %v739_v37 }
 0x4bb   : > { %v881_v43 = vsel %vm878_vm6, %v880_v39, %v876_v41 }
 0x4bc   : > { %v888_v46 = vmul.f32 %v886_v44, %v881_v43  ;;  %v744_v47 = vsel %vm743_vm8, %v1980_v31, %v740_v42 }
 0x4bd   : > { %v749_v49 = vsel %vm746_vm9, %v748_v45, %v744_v47 }
 0x4be   : > { %895 = vrot.lane.b32.xlu2 %v888_v46, %s2339_s20  ;;  %v756_v51 = vmul.f32 %v754_v48, %v749_v49 }
 0x4c0   : > { %763 = vrot.lane.b32.xlu1 %v756_v51, %s2339_s20 }
 0x4c8   : > { %890 = vrot.lane.b32.xlu1 %v2666_v9, %s2337_s17 }
 0x4d0   : > { %970 = vrot.lane.b32.xlu1 %v968_v56, %s2337_s17 }
 0x518   : > { %v896_v59 = vpop.permute.xlu2 %895 }
 0x519   : > { %v2702_v61 = vsel %vm2695_vm11, %v896_v59, %v2625_v33  ;;  %v899_v55 = vsel %vm2695_vm11, %v896_v59, 0.0 }
 0x51a   : > { %1788 = vmatmul.msk.f32.vlgmr.msrb.gmra.mxu1 %vm482_vm1, %v899_v55  ;;  %1793 = vmatmul.msk.f32.vlgmr.msrb.gmra.mxu2 %vm482_vm1, %v2702_v61 }
 0x532   : > { %v764_v63 = vpop.permute.xlu1 %763 }
 0x533   : > { %v2712_v7 = vsel %vm2596_vm10, %v764_v63, %v2610_v30 }
 0x534   : > { %1787 = vmatmul.msk.f32.vlgmr.msrb.gmra.mxu0 %vm482_vm1, %v2712_v7 }
 0x53a   : > { %v891_v17 = vpop.permute.xlu1 %890 }
 0x53b   : > { %v2731_v18 = vsel %vm2695_vm11, %v891_v17, %v2603_v0 }
 0x53c   : > { %v1100_v19 = vmul.f32 %v2553_v11, %v2731_v18  ;;  %v1079_v20 = vmul.f32 %v2561_v13, %v2731_v18 }
 0x542   : > { %v971_v51 = vpop.permute.xlu1 %970 }
 0x597   : > { %v943_v14 = vpop.f32.mrf.mxu1 }
 0x59d   : > { %v1075_v33 = vpop.f32.mrf.mxu2 }
 0x59e   : > { %v2717_v9 = vadd.f32 %v1792_v8, %v1075_v33 }
 0x5a0   : > { %1981 = vtanh.f32 %v2717_v9  ;;  %v1080_v22 = vadd.f32 %v1079_v20, %v2717_v9 }
 0x5a2   : > { %v1794_v23 = vmul.f32 -1.442695, %v1080_v22 }
 0x5a6   : > { %v1982_v10 = vpop.eup %1981 }
 0x5a7   : > { %1132 = vrot.lane.b32.xlu0 %v1982_v10, %s2338_s29 }
 0x5af   : > { %995 = vrot.lane.b32.xlu0 %v2688_v53, %s2337_s17 }
 0x5b1   : > { %v920_v15 = vpop.f32.mrf.mxu0 }
 0x5b2   : > { %v944_v62 = vadd.f32 %v943_v14, %v920_v15 }
 0x5b4   : > { %v2724_v30 = vadd.f32 %v2631_v3, %v944_v62 }
 0x5b6   : > { %1983 = vtanh.f32 %v2724_v30  ;;  %v948_v21 = vadd.f32 %v947_v6, %v2724_v30  ;;  %v973_v52 = vadd.f32 %v971_v51, %v2724_v30 }
 0x5b8   : > { %v1789_v0 = vmul.f32 -1.442695, %v948_v21  ;;  %v1790_v57 = vmul.f32 -1.442695, %v973_v52 }
 0x5ba   : > { %1985 = vpow2.f32 %v1789_v0 }
 0x5bb   : > { %1987 = vpow2.f32 %v1794_v23 }
 0x5bc   : > { %v1984_v16 = vpop.eup %1983 }
 0x5bd   : > { %1000 = vrot.lane.b32.xlu2 %v1984_v16, %s2338_s29 }
 0x5c0   : > { %v1986_v11 = vpop.eup %1985 }
 0x5c1   : > { %v1988_v24 = vpop.eup %1987  ;;  %v952_v25 = vadd.f32 1.0, %v1986_v11 }
 0x5c2   : > { %v1084_v26 = vadd.f32 1.0, %v1988_v24 }
 0x5c3   : > { %1989 = vrcp.f32 %v952_v25  ;;  %v964_v4 = vand.u32 2147483648, %v952_v25  ;;  %vm958_vm12 = vweird.f32 %v952_v25  ;;  %v962_v5 = vand.u32 2147483647, %v952_v25 }
 0x5c4   : > { %1991 = vrcp.f32 %v1084_v26  ;;  %v1096_v34 = vand.u32 2147483648, %v1084_v26  ;;  %vm1090_vm15 = vweird.f32 %v1084_v26  ;;  %v1094_v38 = vand.u32 2147483647, %v1084_v26 }
 0x5c5   : > { %1102 = vrot.lane.b32.xlu2 %v1100_v19, %s2337_s17  ;;  %v965_v39 = vor.u32 1.1754944e-38, %v964_v4  ;;  %vm963_vm2 = vcmp.eq.f32.partialorder %v962_v5, 8.507059e+37  ;;  %1993 = vpow2.f32 %v1790_v57 }
 0x5c6   : > { %v1097_v44 = vor.u32 1.1754944e-38, %v1096_v34  ;;  %vm1095_vm3 = vcmp.eq.f32.partialorder %v1094_v38, 8.507059e+37 }
 0x5c9   : > { %v1990_v27 = vpop.eup %1989 }
 0x5ca   : > { %v1992_v28 = vpop.eup %1991  ;;  %v954_v29 = vmul.f32 %v1990_v27, %v952_v25  ;;  %vm959_vm10 = vweird.f32 %v1990_v27 }
 0x5cb   : > { %v1086_v31 = vmul.f32 %v1992_v28, %v1084_v26  ;;  %vm1091_vm13 = vweird.f32 %v1992_v28  ;;  %vm960_vm14 = vmor %vm958_vm12, %vm959_vm10  ;;  %v1994_v55 = vpop.eup %1993 }
 0x5cc   : > { %v955_v32 = vsub.f32 1.0, %v954_v29  ;;  %vm1092_vm0 = vmor %vm1090_vm15, %vm1091_vm13  ;;  %v977_v8 = vadd.f32 1.0, %v1994_v55 }
 0x5cd   : > { %1127 = vrot.lane.b32.xlu2 %v2731_v18, %s2337_s17  ;;  %v1087_v13 = vsub.f32 1.0, %v1086_v31 }
 0x5ce   : > { %v956_v1 = vmul.f32 %v1990_v27, %v955_v32  ;;  %vm983_vm6 = vweird.f32 %v977_v8  ;;  %v989_v22 = vand.u32 2147483648, %v977_v8  ;;  %v987_v23 = vand.u32 2147483647, %v977_v8 }
 0x5cf   : > { %v1088_v2 = vmul.f32 %v1992_v28, %v1087_v13 }
 0x5d0   : > { %v957_v35 = vadd.f32 %v1990_v27, %v956_v1  ;;  %vm988_vm10 = vcmp.eq.f32.partialorder %v987_v23, 8.507059e+37 }
 0x5d1   : > { %v1089_v36 = vadd.f32 %v1992_v28, %v1088_v2 }
 0x5d2   : > { %v961_v37 = vsel %vm960_vm14, %v1990_v27, %v957_v35  ;;  %v990_v27 = vor.u32 1.1754944e-38, %v989_v22 }
 0x5d3   : > { %v1093_v41 = vsel %vm1092_vm0, %v1992_v28, %v1089_v36  ;;  %v966_v43 = vsel %vm963_vm2, %v965_v39, %v961_v37 }
 0x5d4   : > { %v1098_v47 = vsel %vm1095_vm3, %v1097_v44, %v1093_v41 }
 0x617   : > { %v1001_v42 = vpop.permute.xlu2 %1000 }
 0x618   : > { %v1003_v45 = vmul.f32 %v1001_v42, %v966_v43 }
 0x619   : > { %v1133_v46 = vpop.permute.xlu0 %1132 }
 0x61a   : > { %v1135_v48 = vmul.f32 %v1133_v46, %v1098_v47  ;;  %1005 = vrot.lane.b32.xlu1 %v1003_v45, %s2337_s17 }
 0x61c   : > { %1137 = vrot.lane.b32.xlu0 %v1135_v48, %s2337_s17 }
 0x61f   : > { %v1103_v49 = vpop.permute.xlu2 %1102 }
 0x620   : > { %v1105_v56 = vadd.f32 %v1103_v49, %v2717_v9 }
 0x621   : > { %v996_v24 = vpop.permute.xlu0 %995 }
 0x622   : > { %v1795_v59 = vmul.f32 -1.442695, %v1105_v56 }
 0x624   : > { %1995 = vpow2.f32 %v1795_v59 }
 0x625   : > { %1997 = vrcp.f32 %v977_v8 }
 0x627   : > { %v1128_v13 = vpop.permute.xlu2 %1127 }
 0x62a   : > { %v1996_v63 = vpop.eup %1995 }
 0x62b   : > { %v1109_v33 = vadd.f32 1.0, %v1996_v63  ;;  %v1998_v10 = vpop.eup %1997 }
 0x62c   : > { %v979_v15 = vmul.f32 %v1998_v10, %v977_v8  ;;  %vm984_vm4 = vweird.f32 %v1998_v10 }
 0x62d   : > { %1999 = vrcp.f32 %v1109_v33  ;;  %v1121_v0 = vand.u32 2147483648, %v1109_v33  ;;  %vm985_vm7 = vmor %vm983_vm6, %vm984_vm4  ;;  %vm1115_vm8 = vweird.f32 %v1109_v33  ;;  %v1119_v11 = vand.u32 2147483647, %v1109_v33 }
 0x62e   : > { %v980_v16 = vsub.f32 1.0, %v979_v15 }
 0x62f   : > { %v1122_v28 = vor.u32 1.1754944e-38, %v1121_v0  ;;  %vm1120_vm12 = vcmp.eq.f32.partialorder %v1119_v11, 8.507059e+37 }
 0x630   : > { %v981_v19 = vmul.f32 %v1998_v10, %v980_v16 }
 0x632   : > { %v982_v20 = vadd.f32 %v1998_v10, %v981_v19 }
 0x633   : > { %v2000_v14 = vpop.eup %1999 }
 0x634   : > { %v1111_v62 = vmul.f32 %v2000_v14, %v1109_v33  ;;  %vm1116_vm5 = vweird.f32 %v2000_v14  ;;  %v986_v25 = vsel %vm985_vm7, %v1998_v10, %v982_v20 }
 0x635   : > { %vm1117_vm9 = vmor %vm1115_vm8, %vm1116_vm5  ;;  %v991_v29 = vsel %vm988_vm10, %v990_v27, %v986_v25 }
 0x636   : > { %v1112_v17 = vsub.f32 1.0, %v1111_v62  ;;  %v998_v32 = vmul.f32 %v996_v24, %v991_v29 }
 0x638   : > { %v1113_v6 = vmul.f32 %v2000_v14, %v1112_v17 }
 0x63a   : > { %v1114_v21 = vadd.f32 %v2000_v14, %v1113_v6 }
 0x63c   : > { %v1118_v26 = vsel %vm1117_vm9, %v2000_v14, %v1114_v21 }
 0x63d   : > { %v1123_v31 = vsel %vm1120_vm12, %v1122_v28, %v1118_v26  ;;  %v1051_v26 = vstv %s1050_s28 }
 0x63e   : > { %v1130_v2 = vmul.f32 %v1128_v13, %v1123_v31  ;;  %vm2770_vm6 = vcmp.gt.s32.totalorder %v2592_v60, %v1051_v26  ;;  %v1802_v31 = vld [vmem:[%s2501_s1 + $0x6] sm:$0x3] }
 0x68c   : > { %v1006_v1 = vpop.permute.xlu1 %1005 }
 0x68d   : > { %v1008_v35 = vadd.f32 %v1006_v1, %v998_v32 }
 0x68e   : > { %v1138_v4 = vpop.permute.xlu0 %1137 }
 0x68f   : > { %2001 = vtanh.f32 %v1008_v35  ;;  %v1140_v5 = vadd.f32 %v1138_v4, %v1130_v2  ;;  %v1009_v36 = vmul.f32 %v1008_v35, %v2668_v12 }
 0x691   : > { %2003 = vtanh.f32 %v1140_v5  ;;  %1011 = vrot.lane.b32.xlu1 %v1009_v36, %s2339_s20  ;;  %v1141_v34 = vmul.f32 %v1140_v5, %v2572_v50 }
 0x693   : > { %1143 = vrot.lane.b32.xlu2 %v1141_v34, %s2339_s20 }
 0x695   : > { %v2002_v37 = vpop.eup %2001 }
 0x696   : > { %1036 = vrot.lane.b32.xlu0 %v2002_v37, %s2339_s20 }
 0x697   : > { %v2004_v38 = vpop.eup %2003 }
 0x699   : > { %1168 = vrot.lane.b32.xlu1 %v2004_v38, %s2339_s20 }
 0x6a1   : > { %1041 = vrot.lane.b32.xlu1 %v1008_v35, %s2337_s17 }
 0x6ed   : > { %v1144_v39 = vpop.permute.xlu2 %1143 }
 0x6ee   : > { %v1146_v41 = vadd.f32 %v1144_v39, %v2717_v9 }
 0x6f0   : > { %v1796_v42 = vmul.f32 -1.442695, %v1146_v41 }
 0x6f2   : > { %2005 = vpow2.f32 %v1796_v42 }
 0x6f8   : > { %v2006_v43 = vpop.eup %2005 }
 0x6f9   : > { %v1150_v44 = vadd.f32 1.0, %v2006_v43 }
 0x6fb   : > { %2007 = vrcp.f32 %v1150_v44  ;;  %v1162_v51 = vand.u32 2147483648, %v1150_v44  ;;  %v1160_v57 = vand.u32 2147483647, %v1150_v44  ;;  %vm1156_vm14 = vweird.f32 %v1150_v44 }
 0x6fd   : > { %v1163_v9 = vor.u32 1.1754944e-38, %v1162_v51  ;;  %vm1161_vm0 = vcmp.eq.f32.partialorder %v1160_v57, 8.507059e+37 }
 0x701   : > { %v2008_v45 = vpop.eup %2007 }
 0x702   : > { %v1152_v46 = vmul.f32 %v2008_v45, %v1150_v44  ;;  %vm1157_vm13 = vweird.f32 %v2008_v45 }
 0x703   : > { %v1012_v47 = vpop.permute.xlu1 %1011  ;;  %vm1158_vm15 = vmor %vm1156_vm14, %vm1157_vm13 }
 0x704   : > { %v1014_v48 = vadd.f32 %v1012_v47, %v2724_v30  ;;  %v1153_v49 = vsub.f32 1.0, %v1152_v46 }
 0x706   : > { %v1791_v52 = vmul.f32 -1.442695, %v1014_v48  ;;  %v1154_v56 = vmul.f32 %v2008_v45, %v1153_v49 }
 0x708   : > { %2009 = vpow2.f32 %v1791_v52  ;;  %v1155_v59 = vadd.f32 %v2008_v45, %v1154_v56  ;;  %v1037_v0 = vpop.permute.xlu0 %1036 }
 0x70a   : > { %v1159_v55 = vsel %vm1158_vm15, %v2008_v45, %v1155_v59 }
 0x70b   : > { %v1169_v63 = vpop.permute.xlu1 %1168  ;;  %v1164_v8 = vsel %vm1161_vm0, %v1163_v9, %v1159_v55 }
 0x70c   : > { %v1171_v33 = vmul.f32 %v1169_v63, %v1164_v8 }
 0x70e   : > { %v2010_v10 = vpop.eup %2009  ;;  %1178 = vrot.lane.b32.xlu0 %v1171_v33, %s2339_s20 }
 0x70f   : > { %v1018_v30 = vadd.f32 1.0, %v2010_v10 }
 0x711   : > { %2011 = vrcp.f32 %v1018_v30  ;;  %v1030_v16 = vand.u32 2147483648, %v1018_v30  ;;  %v1028_v19 = vand.u32 2147483647, %v1018_v30  ;;  %vm1024_vm3 = vweird.f32 %v1018_v30 }
 0x713   : > { %v1031_v20 = vor.u32 1.1754944e-38, %v1030_v16  ;;  %vm1029_vm5 = vcmp.eq.f32.partialorder %v1028_v19, 8.507059e+37  ;;  %v1042_v11 = vpop.permute.xlu1 %1041 }
 0x714   : > { %v2763_v24 = vsel %vm2695_vm11, %v1042_v11, %v2688_v53 }
 0x715   : > { %v1251_v25 = vmul.f32 %v2581_v54, %v2763_v24  ;;  %v1230_v38 = vmul.f32 %v2650_v40, %v2763_v24 }
 0x717   : > { %v2012_v14 = vpop.eup %2011 }
 0x718   : > { %v1020_v15 = vmul.f32 %v2012_v14, %v1018_v30  ;;  %vm1025_vm2 = vweird.f32 %v2012_v14 }
 0x719   : > { %vm1026_vm4 = vmor %vm1024_vm3, %vm1025_vm2 }
 0x71a   : > { %v1021_v62 = vsub.f32 1.0, %v1020_v15 }
 0x71c   : > { %v1022_v17 = vmul.f32 %v2012_v14, %v1021_v62 }
 0x71e   : > { %v1023_v6 = vadd.f32 %v2012_v14, %v1022_v17 }
 0x720   : > { %v1027_v21 = vsel %vm1026_vm4, %v2012_v14, %v1023_v6 }
 0x721   : > { %v1032_v22 = vsel %vm1029_vm5, %v1031_v20, %v1027_v21 }
 0x722   : > { %v1039_v23 = vmul.f32 %v1037_v0, %v1032_v22 }
 0x724   : > { %1046 = vrot.lane.b32.xlu2 %v1039_v23, %s2339_s20 }
 0x72c   : > { %1173 = vrot.lane.b32.xlu2 %v1140_v5, %s2337_s17  ;;  %v2061_v5 = vld [vmem:[%s2934_s7] ss:$0 sm:$0xff] }
 0x734   : > { %1253 = vrot.lane.b32.xlu2 %v1251_v25, %s2337_s17 }
 0x77e   : > { %v1047_v27 = vpop.permute.xlu2 %1046 }
 0x77f   : > { %v2777_v29 = vsel %vm2695_vm11, %v1047_v27, %v2712_v7 }
 0x780   : > { %1797 = vmatmul.msk.f32.vlgmr.msrb.gmra.mxu3 %vm482_vm1, %v2777_v29  ;;  %v1179_v54 = vpop.permute.xlu0 %1178 }
 0x781   : > { %v2784_v53 = vsel %vm2770_vm6, %v1179_v54, %v2702_v61  ;;  %v1182_v60 = vsel %vm2770_vm6, %v1179_v54, 0.0 }
 0x782   : > { %1798 = vmatmul.msk.f32.vlgmr.msra.gmra.mxu0 %vm482_vm1, %v1182_v60  ;;  %1803 = vmatmul.msk.f32.vlgmr.msra.gmra.mxu1 %vm482_vm1, %v2784_v53 }
 0x786   : > { %v1174_v58 = vpop.permute.xlu2 %1173 }
 0x787   : > { %v2794_v7 = vsel %vm2770_vm6, %v1174_v58, %v2731_v18 }
 0x788   : > { %1410 = vrot.lane.b32.xlu2 %v2794_v7, %s2337_s17  ;;  %v1383_v36 = vmul.f32 %v2061_v5, %v2794_v7 }
 0x78e   : > { %v1254_v23 = vpop.permute.xlu2 %1253 }
 0x7ff   : > { %v1358_v61 = vpop.f32.mrf.mxu1  ;;  %v1226_v13 = vpop.f32.mrf.mxu0 }
 0x800   : > { %v2799_v32 = vadd.f32 %v1802_v31, %v1358_v61 }
 0x802   : > { %2013 = vtanh.f32 %v2799_v32 }
 0x803   : > { %v1203_v1 = vpop.f32.mrf.mxu3 }
 0x804   : > { %v1227_v2 = vadd.f32 %v1226_v13, %v1203_v1 }
 0x806   : > { %v2803_v35 = vadd.f32 %v2631_v3, %v1227_v2  ;;  %v2062_v3 = vld [vmem:[%s2933_s6] ss:$0 sm:$0xff] }
 0x807   : > { %v1362_v34 = vmul.f32 %v2062_v3, %v2794_v7 }
 0x808   : > { %v2014_v4 = vpop.eup %2013  ;;  %2015 = vtanh.f32 %v2803_v35  ;;  %v1231_v41 = vadd.f32 %v1230_v38, %v2803_v35  ;;  %v1256_v11 = vadd.f32 %v1254_v23, %v2803_v35 }
 0x809   : > { %1415 = vrot.lane.b32.xlu1 %v2014_v4, %s2338_s29  ;;  %v1363_v37 = vadd.f32 %v1362_v34, %v2799_v32 }
 0x80a   : > { %v1799_v42 = vmul.f32 -1.442695, %v1231_v41  ;;  %v1800_v25 = vmul.f32 -1.442695, %v1256_v11 }
 0x80b   : > { %v1804_v39 = vmul.f32 -1.442695, %v1363_v37 }
 0x80d   : > { %2017 = vpow2.f32 %v1804_v39 }
 0x80e   : > { %v2016_v18 = vpop.eup %2015  ;;  %2019 = vpow2.f32 %v1799_v42  ;;  %v1411_v42 = vpop.permute.xlu2 %1410 }
 0x80f   : > { %1283 = vrot.lane.b32.xlu0 %v2016_v18, %s2338_s29 }
 0x811   : > { %1278 = vrot.lane.b32.xlu1 %v2763_v24, %s2337_s17 }
 0x813   : > { %v2018_v43 = vpop.eup %2017 }
 0x814   : > { %v1367_v44 = vadd.f32 1.0, %v2018_v43  ;;  %v2020_v45 = vpop.eup %2019 }
 0x815   : > { %v1235_v46 = vadd.f32 1.0, %v2020_v45 }
 0x816   : > { %2021 = vrcp.f32 %v1367_v44  ;;  %v1379_v59 = vand.u32 2147483648, %v1367_v44  ;;  %vm1373_vm7 = vweird.f32 %v1367_v44  ;;  %v1377_v9 = vand.u32 2147483647, %v1367_v44 }
 0x817   : > { %1385 = vrot.lane.b32.xlu0 %v1383_v36, %s2337_s17  ;;  %2023 = vrcp.f32 %v1235_v46  ;;  %v1247_v14 = vand.u32 2147483648, %v1235_v46  ;;  %vm1241_vm12 = vweird.f32 %v1235_v46  ;;  %v1245_v62 = vand.u32 2147483647, %v1235_v46 }
 0x818   : > { %v1380_v8 = vor.u32 1.1754944e-38, %v1379_v59  ;;  %vm1378_vm9 = vcmp.eq.f32.partialorder %v1377_v9, 8.507059e+37 }
 0x819   : > { %v1248_v17 = vor.u32 1.1754944e-38, %v1247_v14  ;;  %vm1246_vm14 = vcmp.eq.f32.partialorder %v1245_v62, 8.507059e+37 }
 0x81c   : > { %v2022_v47 = vpop.eup %2021 }
 0x81d   : > { %v1369_v48 = vmul.f32 %v2022_v47, %v1367_v44  ;;  %v2024_v49 = vpop.eup %2023  ;;  %vm1374_vm11 = vweird.f32 %v2022_v47 }
 0x81e   : > { %v1237_v52 = vmul.f32 %v2024_v49, %v1235_v46  ;;  %vm1375_vm8 = vmor %vm1373_vm7, %vm1374_vm11  ;;  %vm1242_vm10 = vweird.f32 %v2024_v49 }
 0x81f   : > { %v1370_v51 = vsub.f32 1.0, %v1369_v48  ;;  %vm1243_vm13 = vmor %vm1241_vm12, %vm1242_vm10 }
 0x820   : > { %v1238_v57 = vsub.f32 1.0, %v1237_v52 }
 0x821   : > { %v1371_v56 = vmul.f32 %v2022_v47, %v1370_v51 }
 0x822   : > { %v1239_v55 = vmul.f32 %v2024_v49, %v1238_v57 }
 0x823   : > { %v1372_v40 = vadd.f32 %v2022_v47, %v1371_v56 }
 0x824   : > { %v1240_v33 = vadd.f32 %v2024_v49, %v1239_v55 }
 0x825   : > { %v1376_v63 = vsel %vm1375_vm8, %v2022_v47, %v1372_v40 }
 0x826   : > { %v1381_v30 = vsel %vm1378_vm9, %v1380_v8, %v1376_v63  ;;  %v1244_v16 = vsel %vm1243_vm13, %v2024_v49, %v1240_v33 }
 0x827   : > { %v1249_v6 = vsel %vm1246_vm14, %v1248_v17, %v1244_v16 }
 0x87b   : > { %v1416_v10 = vpop.permute.xlu1 %1415 }
 0x87c   : > { %v1418_v15 = vmul.f32 %v1416_v10, %v1381_v30 }
 0x87e   : > { %1420 = vrot.lane.b32.xlu1 %v1418_v15, %s2337_s17 }
 0x881   : > { %v1284_v19 = vpop.permute.xlu0 %1283 }
 0x882   : > { %v1286_v20 = vmul.f32 %v1284_v19, %v1249_v6 }
 0x883   : > { %v1279_v3 = vpop.permute.xlu1 %1278 }
 0x884   : > { %1288 = vrot.lane.b32.xlu0 %v1286_v20, %s2337_s17 }
 0x889   : > { %v1386_v21 = vpop.permute.xlu0 %1385 }
 0x88a   : > { %v1388_v22 = vadd.f32 %v1386_v21, %v2799_v32 }
 0x88c   : > { %v1805_v0 = vmul.f32 -1.442695, %v1388_v22 }
 0x88e   : > { %2025 = vpow2.f32 %v1805_v0 }
 0x88f   : > { %2027 = vpow2.f32 %v1800_v25 }
 0x894   : > { %v2026_v26 = vpop.eup %2025 }
 0x895   : > { %v1392_v27 = vadd.f32 1.0, %v2026_v26  ;;  %v2028_v54 = vpop.eup %2027 }
 0x896   : > { %v1260_v60 = vadd.f32 1.0, %v2028_v54 }
 0x897   : > { %2029 = vrcp.f32 %v1392_v27  ;;  %v1404_v5 = vand.u32 2147483648, %v1392_v27  ;;  %vm1398_vm0 = vweird.f32 %v1392_v27  ;;  %v1402_v36 = vand.u32 2147483647, %v1392_v27 }
 0x898   : > { %2031 = vrcp.f32 %v1260_v60  ;;  %v1272_v43 = vand.u32 2147483648, %v1260_v60  ;;  %vm1266_vm5 = vweird.f32 %v1260_v60  ;;  %v1270_v44 = vand.u32 2147483647, %v1260_v60 }
 0x899   : > { %v1405_v38 = vor.u32 1.1754944e-38, %v1404_v5  ;;  %vm1403_vm3 = vcmp.eq.f32.partialorder %v1402_v36, 8.507059e+37  ;;  %v2063_v36 = vld [vmem:[%s2934_s7 + $0x1] ss:$0 sm:$0xff] }
 0x89a   : > { %v1273_v49 = vor.u32 1.1754944e-38, %v1272_v43  ;;  %vm1271_vm7 = vcmp.eq.f32.partialorder %v1270_v44, 8.507059e+37 }
 0x89d   : > { %v2030_v58 = vpop.eup %2029 }
 0x89e   : > { %v1394_v31 = vmul.f32 %v2030_v58, %v1392_v27  ;;  %v2032_v13 = vpop.eup %2031  ;;  %vm1399_vm15 = vweird.f32 %v2030_v58 }
 0x89f   : > { %v1262_v1 = vmul.f32 %v2032_v13, %v1260_v60  ;;  %vm1400_vm2 = vmor %vm1398_vm0, %vm1399_vm15  ;;  %vm1267_vm4 = vweird.f32 %v2032_v13 }
 0x8a0   : > { %v1395_v61 = vsub.f32 1.0, %v1394_v31  ;;  %vm1268_vm11 = vmor %vm1266_vm5, %vm1267_vm4 }
 0x8a1   : > { %v1263_v4 = vsub.f32 1.0, %v1262_v1 }
 0x8a2   : > { %v1396_v2 = vmul.f32 %v2030_v58, %v1395_v61 }
 0x8a3   : > { %v1264_v34 = vmul.f32 %v2032_v13, %v1263_v4 }
 0x8a4   : > { %v1397_v18 = vadd.f32 %v2030_v58, %v1396_v2 }
 0x8a5   : > { %v1265_v41 = vadd.f32 %v2032_v13, %v1264_v34 }
 0x8a6   : > { %v1401_v37 = vsel %vm1400_vm2, %v2030_v58, %v1397_v18 }
 0x8a7   : > { %v1406_v39 = vsel %vm1403_vm3, %v1405_v38, %v1401_v37  ;;  %v1269_v47 = vsel %vm1268_vm11, %v2032_v13, %v1265_v41  ;;  %v1334_v38 = vstv %s1333_s19  ;;  %vm1616_vm3 = vcmask 254976  }
 0x8a8   : > { %v1413_v45 = vmul.f32 %v1411_v42, %v1406_v39  ;;  %v1274_v52 = vsel %vm1271_vm7, %v1273_v49, %v1269_v47  ;;  %v2064_v39 = vld [vmem:[#allocation7] sm:$0x3] }
 0x8a9   : > { %v1281_v56 = vmul.f32 %v1279_v3, %v1274_v52  ;;  %vm2862_vm2 = vcmp.gt.s32.totalorder %v2064_v39, %v1334_v38 }
 0x8f0   : > { %v1421_v46 = vpop.permute.xlu1 %1420 }
 0x8f1   : > { %v2827_v48 = vadd.f32 %v1421_v46, %v1413_v45  ;;  %v2065_v46 = vld [vmem:[#allocation13] ss:$0 sm:$0xff] }
 0x8f3   : > { %v1424_v51 = vmul.f32 %v2827_v48, %v2572_v50 }
 0x8f5   : > { %1426 = vrot.lane.b32.xlu0 %v1424_v51, %s2339_s20 }
 0x8f6   : > { %v1289_v57 = vpop.permute.xlu0 %1288 }
 0x8f7   : > { %v1291_v40 = vadd.f32 %v1289_v57, %v1281_v56 }
 0x8f9   : > { %2033 = vtanh.f32 %v1291_v40  ;;  %v1292_v59 = vmul.f32 %v1291_v40, %v2668_v12 }
 0x8fa   : > { %2035 = vtanh.f32 %v2827_v48 }
 0x8fb   : > { %1294 = vrot.lane.b32.xlu2 %v1292_v59, %s2339_s20 }
 0x8ff   : > { %v2034_v9 = vpop.eup %2033 }
 0x900   : > { %1319 = vrot.lane.b32.xlu1 %v2034_v9, %s2339_s20  ;;  %v2036_v55 = vpop.eup %2035 }
 0x903   : > { %1451 = vrot.lane.b32.xlu2 %v2036_v55, %s2339_s20 }
 0x90b   : > { %1324 = vrot.lane.b32.xlu2 %v1291_v40, %s2337_s17 }
 0x955   : > { %v1295_v50 = vpop.permute.xlu2 %1294 }
 0x956   : > { %v1297_v63 = vadd.f32 %v1295_v50, %v2803_v35 }
 0x958   : > { %v1801_v8 = vmul.f32 -1.442695, %v1297_v63 }
 0x95a   : > { %2037 = vpow2.f32 %v1801_v8 }
 0x95d   : > { %v1452_v33 = vpop.permute.xlu2 %1451 }
 0x960   : > { %v2038_v10 = vpop.eup %2037 }
 0x961   : > { %v1301_v30 = vadd.f32 1.0, %v2038_v10 }
 0x963   : > { %2039 = vrcp.f32 %v1301_v30  ;;  %v1313_v20 = vand.u32 2147483648, %v1301_v30  ;;  %v1311_v22 = vand.u32 2147483647, %v1301_v30  ;;  %vm1307_vm9 = vweird.f32 %v1301_v30 }
 0x965   : > { %v1325_v14 = vpop.permute.xlu2 %1324  ;;  %vm1312_vm12 = vcmp.eq.f32.partialorder %v1311_v22, 8.507059e+37 }
 0x966   : > { %v2842_v15 = vsel %vm2770_vm6, %v1325_v14, %v2763_v24  ;;  %v1314_v24 = vor.u32 1.1754944e-38, %v1313_v20 }
 0x967   : > { %1561 = vrot.lane.b32.xlu2 %v2842_v15, %s2337_s17  ;;  %v1427_v62 = vpop.permute.xlu0 %1426  ;;  %v1534_v3 = vmul.f32 %v2063_v36, %v2842_v15 }
 0x968   : > { %v1429_v16 = vadd.f32 %v1427_v62, %v2799_v32 }
 0x969   : > { %v2040_v17 = vpop.eup %2039 }
 0x96a   : > { %v1806_v35 = vmul.f32 -1.442695, %v1429_v16  ;;  %v1303_v19 = vmul.f32 %v2040_v17, %v1301_v30  ;;  %vm1308_vm8 = vweird.f32 %v2040_v17 }
 0x96b   : > { %vm1309_vm10 = vmor %vm1307_vm9, %vm1308_vm8 }
 0x96c   : > { %2041 = vpow2.f32 %v1806_v35  ;;  %v1304_v6 = vsub.f32 1.0, %v1303_v19 }
 0x96e   : > { %v1305_v21 = vmul.f32 %v2040_v17, %v1304_v6 }
 0x970   : > { %v1306_v0 = vadd.f32 %v2040_v17, %v1305_v21 }
 0x972   : > { %v2042_v23 = vpop.eup %2041  ;;  %v1310_v11 = vsel %vm1309_vm10, %v2040_v17, %v1306_v0  ;;  %v1320_v25 = vpop.permute.xlu1 %1319 }
 0x973   : > { %v1433_v26 = vadd.f32 1.0, %v2042_v23  ;;  %v1315_v27 = vsel %vm1312_vm12, %v1314_v24, %v1310_v11 }
 0x974   : > { %v1322_v32 = vmul.f32 %v1320_v25, %v1315_v27 }
 0x975   : > { %2043 = vrcp.f32 %v1433_v26  ;;  %v1445_v31 = vand.u32 2147483648, %v1433_v26  ;;  %v1443_v13 = vand.u32 2147483647, %v1433_v26  ;;  %vm1439_vm14 = vweird.f32 %v1433_v26 }
 0x976   : > { %1329 = vrot.lane.b32.xlu0 %v1322_v32, %s2339_s20 }
 0x977   : > { %v1446_v2 = vor.u32 1.1754944e-38, %v1445_v31  ;;  %vm1444_vm0 = vcmp.eq.f32.partialorder %v1443_v13, 8.507059e+37 }
 0x97b   : > { %v2044_v54 = vpop.eup %2043 }
 0x97c   : > { %v1435_v60 = vmul.f32 %v2044_v54, %v1433_v26  ;;  %vm1440_vm13 = vweird.f32 %v2044_v54 }
 0x97d   : > { %vm1441_vm15 = vmor %vm1439_vm14, %vm1440_vm13 }
 0x97e   : > { %v1436_v58 = vsub.f32 1.0, %v1435_v60 }
 0x980   : > { %v1437_v61 = vmul.f32 %v2044_v54, %v1436_v58 }
 0x982   : > { %v1438_v1 = vadd.f32 %v2044_v54, %v1437_v61 }
 0x984   : > { %v1442_v4 = vsel %vm1441_vm15, %v2044_v54, %v1438_v1 }
 0x985   : > { %v1447_v18 = vsel %vm1444_vm0, %v1446_v2, %v1442_v4 }
 0x986   : > { %v1454_v5 = vmul.f32 %v1452_v33, %v1447_v18 }
 0x988   : > { %1461 = vrot.lane.b32.xlu1 %v1454_v5, %s2339_s20 }
 0x990   : > { %1536 = vrot.lane.b32.xlu1 %v1534_v3, %s2337_s17 }
 0x9c1   : > { %v1562_v32 = vpop.permute.xlu2 %1561 }
 0x9e8   : > { %v1330_v34 = vpop.permute.xlu0 %1329 }
 0x9e9   : > { %v2857_v37 = vsel %vm2770_vm6, %v1330_v34, %v2777_v29 }
 0x9ea   : > { %1807 = vmatmul.msk.f32.vlgmr.msra.gmra.mxu2 %vm482_vm1, %v2857_v37 }
 0x9fa   : > { %v1462_v42 = vpop.permute.xlu1 %1461 }
 0x9fb   : > { %v2869_v43 = vsel %vm2862_vm2, %v1462_v42, %v2784_v53  ;;  %v1465_v28 = vsel %vm2862_vm2, %v1462_v42, 0.0  ;;  %v2066_v53 = vld [vmem:[%s2933_s6 + $0x1] ss:$0 sm:$0xff] }
 0x9fc   : > { %1618 = vst.msk [vmem:[#allocation3] sm:$0x3] %vm1616_vm3, %v2869_v43  ;;  %1808 = vmatmul.msk.f32.vlgmr.msra.gmra.mxu3 %vm482_vm1, %v1465_v28  ;;  %v1513_v51 = vmul.f32 %v2066_v53, %v2842_v15 }
 0xa02   : > { %v1537_v17 = vpop.permute.xlu1 %1536 }
 0xa6d   : > { %v1486_v29 = vpop.f32.mrf.mxu2 }
 0xa7f   : > { %v1509_v44 = vpop.f32.mrf.mxu3 }
 0xa80   : > { %v1510_v45 = vadd.f32 %v1509_v44, %v1486_v29 }
 0xa82   : > { %v2876_v47 = vadd.f32 %v2065_v46, %v1510_v45 }
 0xa84   : > { %2045 = vtanh.f32 %v2876_v47  ;;  %v1514_v52 = vadd.f32 %v1513_v51, %v2876_v47  ;;  %v1539_v35 = vadd.f32 %v1537_v17, %v2876_v47 }
 0xa86   : > { %v1809_v56 = vmul.f32 -1.442695, %v1514_v52  ;;  %v1810_v19 = vmul.f32 -1.442695, %v1539_v35 }
 0xa88   : > { %2047 = vpow2.f32 %v1809_v56 }
 0xa8a   : > { %v2046_v49 = vpop.eup %2045 }
 0xa8b   : > { %1566 = vrot.lane.b32.xlu0 %v2046_v49, %s2338_s29  ;;  %s2341_s29 = smov (!%p1812_p1), 96  }
 0xa8e   : > { %v2048_v57 = vpop.eup %2047 }
 0xa8f   : > { %v1518_v40 = vadd.f32 1.0, %v2048_v57 }
 0xa91   : > { %2049 = vrcp.f32 %v1518_v40  ;;  %v1530_v8 = vand.u32 2147483648, %v1518_v40  ;;  %vm1524_vm4 = vweird.f32 %v1518_v40  ;;  %v1528_v33 = vand.u32 2147483647, %v1518_v40 }
 0xa92   : > { %2051 = vpow2.f32 %v1810_v19 }
 0xa93   : > { %v1531_v30 = vor.u32 1.1754944e-38, %v1530_v8  ;;  %vm1529_vm11 = vcmp.eq.f32.partialorder %v1528_v33, 8.507059e+37 }
 0xa97   : > { %v2050_v59 = vpop.eup %2049 }
 0xa98   : > { %v1520_v9 = vmul.f32 %v2050_v59, %v1518_v40  ;;  %vm1525_vm6 = vweird.f32 %v2050_v59  ;;  %v2052_v6 = vpop.eup %2051 }
 0xa99   : > { %vm1526_vm5 = vmor %vm1524_vm4, %vm1525_vm6  ;;  %v1543_v20 = vadd.f32 1.0, %v2052_v6 }
 0xa9a   : > { %v1521_v55 = vsub.f32 1.0, %v1520_v9 }
 0xa9b   : > { %2053 = vrcp.f32 %v1543_v20  ;;  %v1555_v11 = vand.u32 2147483648, %v1543_v20  ;;  %vm1549_vm8 = vweird.f32 %v1543_v20  ;;  %v1553_v25 = vand.u32 2147483647, %v1543_v20 }
 0xa9c   : > { %v1522_v50 = vmul.f32 %v2050_v59, %v1521_v55 }
 0xa9d   : > { %vm1554_vm10 = vcmp.eq.f32.partialorder %v1553_v25, 8.507059e+37 }
 0xa9e   : > { %v1523_v63 = vadd.f32 %v2050_v59, %v1522_v50 }
 0xaa0   : > { %v1527_v10 = vsel %vm1526_vm5, %v2050_v59, %v1523_v63 }
 0xaa1   : > { %v1532_v62 = vsel %vm1529_vm11, %v1531_v30, %v1527_v10  ;;  %v2054_v21 = vpop.eup %2053 }
 0xaa2   : > { %v1545_v22 = vmul.f32 %v2054_v21, %v1543_v20  ;;  %vm1550_vm7 = vweird.f32 %v2054_v21 }
 0xaa3   : > { %vm1551_vm9 = vmor %vm1549_vm8, %vm1550_vm7 }
 0xaa4   : > { %v1546_v0 = vsub.f32 1.0, %v1545_v22 }
 0xaa6   : > { %v1547_v24 = vmul.f32 %v2054_v21, %v1546_v0 }
 0xaa8   : > { %v1548_v23 = vadd.f32 %v2054_v21, %v1547_v24 }
 0xaaa   : > { %v1552_v26 = vsel %vm1551_vm9, %v2054_v21, %v1548_v23 }
 0xafd   : > { %v1567_v14 = vpop.permute.xlu0 %1566 }
 0xafe   : > { %v1569_v16 = vmul.f32 %v1567_v14, %v1532_v62 }
 0xb00   : > { %1571 = vrot.lane.b32.xlu0 %v1569_v16, %s2337_s17 }
 0xb08   : > { %1456 = vrot.lane.b32.xlu0 %v2827_v48, %s2337_s17  ;;  %v1556_v48 = vor.u32 1.1754944e-38, %v1555_v11 }
 0xb0a   : > { %v1557_v27 = vsel %vm1554_vm10, %v1556_v48, %v1552_v26 }
 0xb0b   : > { %v1564_v54 = vmul.f32 %v1562_v32, %v1557_v27 }
 0xb72   : > { %v1572_v60 = vpop.permute.xlu0 %1571 }
 0xb73   : > { %v1574_v58 = vadd.f32 %v1572_v60, %v1564_v54 }
 0xb75   : > { %2055 = vtanh.f32 %v1574_v58  ;;  %v1575_v31 = vmul.f32 %v1574_v58, %v2668_v12 }
 0xb77   : > { %1577 = vrot.lane.b32.xlu1 %v1575_v31, %s2339_s20 }
 0xb7a   : > { %v1457_v61 = vpop.permute.xlu0 %1456 }
 0xb7b   : > { %v2056_v13 = vpop.eup %2055  ;;  %v1459_v1 = vsel %vm2862_vm2, %v1457_v61, %v2794_v7 }
 0xb7c   : > { %1617 = vst.msk [vmem:[#allocation2] sm:$0x3] %vm1616_vm3, %v1459_v1  ;;  %1602 = vrot.lane.b32.xlu2 %v2056_v13, %s2339_s20 }
 0xb7f   : > { %1607 = vrot.lane.b32.xlu1 %v1574_v58, %s2337_s17  ;;  %s2340_s17 = smov (!%p1812_p1), 32  }
 0xbd6   : > { %v1603_v46 = vpop.permute.xlu2 %1602 }
 0xbe9   : > { %v1578_v2 = vpop.permute.xlu1 %1577 }
 0xbea   : > { %v1580_v4 = vadd.f32 %v1578_v2, %v2876_v47 }
 0xbec   : > { %v1811_v18 = vmul.f32 -1.442695, %v1580_v4 }
 0xbee   : > { %2057 = vpow2.f32 %v1811_v18 }
 0xbf1   : > { %v1608_v12 = vpop.permute.xlu1 %1607 }
 0xbf2   : > { %v1610_v5 = vsel %vm2862_vm2, %v1608_v12, %v2842_v15 }
 0xbf3   : > { %1619 = vst.msk [vmem:[#allocation2 + $0x2] sm:$0x3] %vm1616_vm3, %v1610_v5 }
 0xbf4   : > { %v2058_v36 = vpop.eup %2057 }
 0xbf5   : > { %v1584_v7 = vadd.f32 1.0, %v2058_v36 }
 0xbf7   : > { %2059 = vrcp.f32 %v1584_v7  ;;  %v1596_v39 = vand.u32 2147483648, %v1584_v7  ;;  %v1594_v28 = vand.u32 2147483647, %v1584_v7  ;;  %vm1590_vm13 = vweird.f32 %v1584_v7 }
 0xbf9   : > { %v1597_v44 = vor.u32 1.1754944e-38, %v1596_v39  ;;  %vm1595_vm15 = vcmp.eq.f32.partialorder %v1594_v28, 8.507059e+37 }
 0xbfd   : > { %v2060_v3 = vpop.eup %2059 }
 0xbfe   : > { %v1586_v34 = vmul.f32 %v2060_v3, %v1584_v7  ;;  %vm1591_vm12 = vweird.f32 %v2060_v3 }
 0xbff   : > { %vm1592_vm14 = vmor %vm1590_vm13, %vm1591_vm12 }
 0xc00   : > { %v1587_v38 = vsub.f32 1.0, %v1586_v34 }
 0xc02   : > { %v1588_v42 = vmul.f32 %v2060_v3, %v1587_v38 }
 0xc04   : > { %v1589_v29 = vadd.f32 %v2060_v3, %v1588_v42 }
 0xc06   : > { %v1593_v45 = vsel %vm1592_vm14, %v2060_v3, %v1589_v29 }
 0xc07   : > { %v1598_v15 = vsel %vm1595_vm15, %v1597_v44, %v1593_v45 }
 0xc08   : > { %v1605_v47 = vmul.f32 %v1603_v46, %v1598_v15 }
 0xc0a   : > { %1612 = vrot.lane.b32.xlu2 %v1605_v47, %s2339_s20 }
 0xc62   : > { %1624 = sbr.rel (%p1812_p1) target bundleno = 3301 (0xce5), region = 88 }
 0xc64   : > { %v1613_v49 = vpop.permute.xlu2 %1612 }
 0xc65   : > { %v1615_v53 = vsel %vm2862_vm2, %v1613_v49, %v2857_v37 }
 0xc66   : > { %1620 = vst.msk [vmem:[#allocation3 + $0x2] sm:$0x3] %vm1616_vm3, %v1615_v53 }
 0xc67   : > { %1626 = vrot.lane.b32.xlu0 %v2869_v43, %s2340_s17  ;;  %1634 = vrot.lane.b32.xlu1 %v1615_v53, %s2341_s29  ;;  %vm1638_vm0 = vcmask 523264   ;;  %vm1640_vm6 = vcmask 785408  }
 0xc6f   : > { %1630 = vrot.lane.b32.xlu0 %v1610_v5, %s2342_s25 }
 0xcd9   : > { %v1627_v51 = vpop.permute.xlu0 %1626  ;;  %v1635_v52 = vpop.permute.xlu1 %1634 }
 0xcda   : > { %v1637_v56 = vsel %vm482_vm1, %v1459_v1, %v1627_v51 }
 0xce1   : > { %v1631_v41 = vpop.permute.xlu0 %1630 }
 0xce2   : > { %v1639_v37 = vsel %vm1638_vm0, %v1637_v56, %v1631_v41 }
 0xce3   : > { %v1641_v57 = vsel %vm1640_vm6, %v1639_v37, %v1635_v52 }
 0xce4   : > { %1642 = vst [vmem:[#allocation15] sm:$0x3] %v1641_v57 }
 0xce5 PF: > { %p1875_p3 = scmp.eq.s32.totalorder %s2418_s16, 1  ;;  %s2343_s20 = smov [#allocation15]  }
 0xce6   : > { %s1649_s12 = sshll.u32 %s2343_s20, 4  ;;  %s1651_s28 = sshll.u32 %s2936_s9, 4  ;;  %s1650_s12 = int_to_ptr.vmem [resolvable:$true] %s1649_s12  ;;  %s1652_s28 = int_to_ptr.hbm [resolvable:$true] %s1651_s28 }
 0xce7   : > { %1841 = dma.vmem_to_hbm [thread:$0]  (%p1875_p3), %s1650_s12, 32, %s1652_s28, [#allocation6]  }
 0xce8   : > { %2308 = dma.done.wait (%p1875_p3), [#allocation6], 32  }
 0xce9   : > { %2310 = vsyncadd (%p1875_p3), [#allocation6], 4294967264 }
 0xcea PF: > { %p23_p4 = scmp.ge.s32.totalorder %s2459_s26, 4   ;;  %s2951_s30 = smov %s2317_s10 }
 0xceb   : > { %s2952_s10 = smov %s2321_s11  ;;  %s2953_s11 = smov %s2470_s24 }
 0xcec   : > { %s2954_s12 = smov %s2459_s26  ;;  %25 = sbr.rel (!%p23_p4) target bundleno = 9 (0x9), region = 129 }
 0xcf1   :  { %1665 = vsyncpa [#allocation5], 1 }
 0xcf2   :  { %1667 = vsyncpa [#allocation5 + $0x1], 1 }
 0xcf3   :  { %1668 = vsyncpa [#allocation8], 1 }
 0xcf4   :  { %1669 = vsyncpa [#allocation11], 1 }
 0xcf5   :  { %1670 = vsyncpa [#allocation14], 1 }
 0xcf6   :  { %1671 = vsyncpa [#allocation6], 1 }
 0xcf7   :  { %1673 = vsyncpa [#allocation6 + $0x1], 1 }

</bundles_post_ra>
